<compile_context>
chip_gen: v7x
topology: tpu7x:2x2x1
jax: 0.10.0
libtpu: 0.0.40
codegen_flags: <defaults>
</compile_context>

<pallas_src>
import functools
import math

import jax
import jax.numpy as jnp
from jax.experimental import pallas as pl
from jax.experimental.pallas import tpu as pltpu


CONFIG = dict(
    vocab_size=100,
    hidden=32,
    num_layers=2,
    num_heads=4,
    intermediate=64,
    max_positions=16,
    type_vocab=1,
)


# ---------------------------------------------------------------------------
# Fused encoder + head kernel
# ---------------------------------------------------------------------------
def _encoder_kernel(
    emb_ref, mask_ref, emb_g_ref, emb_b_ref,
    wqkv_ref, bqkv_ref, wo_ref, bo_ref,
    ln1_g_ref, ln1_b_ref, w1_ref, b1_ref, w2_ref, b2_ref,
    ln2_g_ref, ln2_b_ref,
    pool_w_ref, pool_b_ref, cls_w_ref, cls_b_ref,
    out_ref,
    h_ref, qkv_ref,
    *, batch, seq, hidden, heads, eps,
):
    """One grid step = one encoder layer (plus embedding LN at step 0 and
    pooler+classifier at the last step).  Hidden state carried in h_ref (VMEM)."""
    l = pl.program_id(0)
    hd = hidden // heads
    scale = jnp.float32(1.0 / math.sqrt(hd))

    def layernorm(x, g, b):
        mean = jnp.mean(x, axis=-1, keepdims=True)
        var = jnp.mean((x - mean) ** 2, axis=-1, keepdims=True)
        return (x - mean) * jax.lax.rsqrt(var + eps) * g + b

    # --- embedding LayerNorm (only once, no zero residual) ---
    @pl.when(l == 0)
    def _():
        h_ref[...] = layernorm(emb_ref[...], emb_g_ref[...], emb_b_ref[...])

    h = h_ref[...]                                                   # (B*S, H)

    # --- fused QKV projection: one lane-dense (B*S, 3H) matmul ---
    qkv_ref[...] = (
        jnp.dot(h, wqkv_ref[0], preferred_element_type=jnp.float32) + bqkv_ref[0]
    )

    # --- attention: all (batch, head) pairs inside this single kernel ---
    neg = jnp.float32(-1e9)
    batch_ctx = []
    for b in range(batch):
        bias_b = (1.0 - mask_ref[b:b + 1, :]) * neg                  # (1, S) key bias
        r0 = b * seq
        head_ctx = []
        for hh in range(heads):
            c0 = hh * hd
            q = qkv_ref[r0:r0 + seq, c0:c0 + hd]                     # (S, D)
            k = qkv_ref[r0:r0 + seq, hidden + c0:hidden + c0 + hd]   # (S, D)
            v = qkv_ref[r0:r0 + seq, 2 * hidden + c0:2 * hidden + c0 + hd]
            s = jnp.dot(q, k.T, preferred_element_type=jnp.float32) * scale + bias_b
            s = s - jnp.max(s, axis=-1, keepdims=True)
            p = jnp.exp(s)
            p = p * pl.reciprocal(jnp.sum(p, axis=-1, keepdims=True), approx=True)
            head_ctx.append(jnp.dot(p, v, preferred_element_type=jnp.float32))
        batch_ctx.append(jnp.concatenate(head_ctx, axis=-1))         # (S, H)
    ctx = jnp.concatenate(batch_ctx, axis=0)                         # (B*S, H)

    # --- output projection + residual + LN ---
    attn_out = jnp.dot(ctx, wo_ref[0], preferred_element_type=jnp.float32) + bo_ref[0]
    h1 = layernorm(attn_out + h, ln1_g_ref[0], ln1_b_ref[0])

    # --- FFN (gelu, tanh approximation) + residual + LN ---
    # TODO(synk): HF roberta uses exact erf GELU; tanh approx differs at tolerance level.
    y = jnp.dot(h1, w1_ref[0], preferred_element_type=jnp.float32) + b1_ref[0]
    c = jnp.float32(math.sqrt(2.0 / math.pi))
    y = 0.5 * y * (1.0 + jnp.tanh(c * (y + 0.044715 * y * y * y)))
    y = jnp.dot(y, w2_ref[0], preferred_element_type=jnp.float32) + b2_ref[0]
    h2 = layernorm(y + h1, ln2_g_ref[0], ln2_b_ref[0])
    h_ref[...] = h2

    # --- pooler (dense+tanh on CLS token) + classifier, only after last layer ---
    # TODO(synk): dropout(p=0.1) is eval-mode identity; training-mode masking not applied.
    @pl.when(l == pl.num_programs(0) - 1)
    def _():
        cls = jnp.concatenate(
            [h_ref[b * seq:b * seq + 1, :] for b in range(batch)], axis=0)   # (B, H)
        pooled = jnp.tanh(
            jnp.dot(cls, pool_w_ref[...], preferred_element_type=jnp.float32)
            + pool_b_ref[...])
        out_ref[...] = (
            jnp.dot(pooled, cls_w_ref[...], preferred_element_type=jnp.float32)
            + cls_b_ref[...])


def _full_spec(shape):
    nd = len(shape)
    return pl.BlockSpec(shape, lambda l, _nd=nd: (0,) * _nd)


def _layer_spec(shape):
    nd = len(shape) + 1
    return pl.BlockSpec((1,) + tuple(shape), lambda l, _nd=nd: (l,) + (0,) * (_nd - 1))


# ---------------------------------------------------------------------------
# Parameters + forward
# ---------------------------------------------------------------------------
def init_params(key, cfg):
    H, I, L = cfg["hidden"], cfg["intermediate"], cfg["num_layers"]
    ks = iter(jax.random.split(key, 16))

    def n(k, shape):
        return 0.02 * jax.random.normal(k, shape, jnp.float32)

    return {
        "word_emb": n(next(ks), (cfg["vocab_size"], H)),
        "pos_emb": n(next(ks), (cfg["max_positions"], H)),
        "type_emb": n(next(ks), (cfg["type_vocab"], H)),
        "emb_ln_g": jnp.ones((1, H), jnp.float32),
        "emb_ln_b": jnp.zeros((1, H), jnp.float32),
        # fused QKV weights: columns are [Wq | Wk | Wv]
        "wqkv": n(next(ks), (L, H, 3 * H)),
        "bqkv": jnp.zeros((L, 1, 3 * H), jnp.float32),
        "wo": n(next(ks), (L, H, H)),
        "bo": jnp.zeros((L, 1, H), jnp.float32),
        "ln1_g": jnp.ones((L, 1, H), jnp.float32),
        "ln1_b": jnp.zeros((L, 1, H), jnp.float32),
        "w1": n(next(ks), (L, H, I)),
        "b1": jnp.zeros((L, 1, I), jnp.float32),
        "w2": n(next(ks), (L, I, H)),
        "b2": jnp.zeros((L, 1, H), jnp.float32),
        "ln2_g": jnp.ones((L, 1, H), jnp.float32),
        "ln2_b": jnp.zeros((L, 1, H), jnp.float32),
        "pool_w": n(next(ks), (H, H)),
        "pool_b": jnp.zeros((1, H), jnp.float32),
        "cls_w": n(next(ks), (H, 1)),       # nn.Linear(EMBED_SIZE, 1)
        "cls_b": jnp.zeros((1, 1), jnp.float32),
    }


def bert_classifier_forward(params, input_ids, mask, cfg):
    B, S = input_ids.shape
    H, nH = cfg["hidden"], cfg["num_heads"]
    I, L = cfg["intermediate"], cfg["num_layers"]
    assert H % nH == 0
    BS = B * S

    # --- embeddings (gather = glue in plain JAX) ---
    positions = jnp.arange(S, dtype=jnp.int32)
    emb = (params["word_emb"][input_ids]
           + params["pos_emb"][positions][None, :, :]
           + params["type_emb"][0][None, None, :])                   # (B, S, H)
    emb2d = emb.reshape(BS, H).astype(jnp.float32)
    maskf = mask.astype(jnp.float32)                                 # (B, S)

    kernel = functools.partial(
        _encoder_kernel, batch=B, seq=S, hidden=H, heads=nH, eps=1e-12)

    in_specs = [
        _full_spec((BS, H)),          # emb
        _full_spec((B, S)),           # mask
        _full_spec((1, H)),           # emb_ln_g
        _full_spec((1, H)),           # emb_ln_b
        _layer_spec((H, 3 * H)),      # wqkv
        _layer_spec((1, 3 * H)),      # bqkv
        _layer_spec((H, H)),          # wo
        _layer_spec((1, H)),          # bo
        _layer_spec((1, H)),          # ln1_g
        _layer_spec((1, H)),          # ln1_b
        _layer_spec((H, I)),          # w1
        _layer_spec((1, I)),          # b1
        _layer_spec((I, H)),          # w2
        _layer_spec((1, H)),          # b2
        _layer_spec((1, H)),          # ln2_g
        _layer_spec((1, H)),          # ln2_b
        _full_spec((H, H)),           # pool_w
        _full_spec((1, H)),           # pool_b
        _full_spec((H, 1)),           # cls_w
        _full_spec((1, 1)),           # cls_b
    ]

    out = pl.pallas_call(
        kernel,
        out_shape=jax.ShapeDtypeStruct((B, 1), jnp.float32),
        grid=(L,),
        in_specs=in_specs,
        out_specs=pl.BlockSpec((B, 1), lambda l: (0, 0)),
        scratch_shapes=[
            pltpu.VMEM((BS, H), jnp.float32),        # hidden state, carried over layers
            pltpu.VMEM((BS, 3 * H), jnp.float32),    # fused QKV activations
        ],
        compiler_params=pltpu.CompilerParams(
            dimension_semantics=("arbitrary",)),     # layer axis carries state
    )(emb2d, maskf,
      params["emb_ln_g"], params["emb_ln_b"],
      params["wqkv"], params["bqkv"], params["wo"], params["bo"],
      params["ln1_g"], params["ln1_b"], params["w1"], params["b1"],
      params["w2"], params["b2"], params["ln2_g"], params["ln2_b"],
      params["pool_w"], params["pool_b"], params["cls_w"], params["cls_b"])
    return out


# ---------------------------------------------------------------------------
if __name__ == "__main__":
    cfg = CONFIG
    key = jax.random.PRNGKey(0)
    k_ids, k_params = jax.random.split(key)

    B, S = 2, 8
    input_ids = jax.random.randint(k_ids, (B, S), 0, cfg["vocab_size"], dtype=jnp.int32)
    mask = jnp.ones((B, S), dtype=jnp.int32).at[1, 6:].set(0)   # second example padded

    params = init_params(k_params, cfg)

    fwd = jax.jit(functools.partial(bert_classifier_forward, cfg=cfg))
    out = jax.block_until_ready(fwd(params, input_ids, mask))

    assert out.shape == (B, 1) and out.dtype == jnp.float32
    assert bool(jnp.all(jnp.isfinite(out)))
    print("KERNEL_OK")
</pallas_src>

<mosaic_0001>
module attributes {stable_mosaic.version = 11 : i64} {
  func.func @_encoder_kernel(%arg0: i32, %arg1: memref<16x32xf32, #tpu.memory_space<vmem>>, %arg2: memref<2x8xf32, #tpu.memory_space<vmem>>, %arg3: memref<1x32xf32, #tpu.memory_space<vmem>>, %arg4: memref<1x32xf32, #tpu.memory_space<vmem>>, %arg5: memref<1x32x96xf32, #tpu.memory_space<vmem>>, %arg6: memref<1x1x96xf32, #tpu.memory_space<vmem>>, %arg7: memref<1x32x32xf32, #tpu.memory_space<vmem>>, %arg8: memref<1x1x32xf32, #tpu.memory_space<vmem>>, %arg9: memref<1x1x32xf32, #tpu.memory_space<vmem>>, %arg10: memref<1x1x32xf32, #tpu.memory_space<vmem>>, %arg11: memref<1x32x64xf32, #tpu.memory_space<vmem>>, %arg12: memref<1x1x64xf32, #tpu.memory_space<vmem>>, %arg13: memref<1x64x32xf32, #tpu.memory_space<vmem>>, %arg14: memref<1x1x32xf32, #tpu.memory_space<vmem>>, %arg15: memref<1x1x32xf32, #tpu.memory_space<vmem>>, %arg16: memref<1x1x32xf32, #tpu.memory_space<vmem>>, %arg17: memref<32x32xf32, #tpu.memory_space<vmem>>, %arg18: memref<1x32xf32, #tpu.memory_space<vmem>>, %arg19: memref<32x1xf32, #tpu.memory_space<vmem>>, %arg20: memref<1x1xf32, #tpu.memory_space<vmem>>, %arg21: memref<2x1xf32, #tpu.memory_space<vmem>>, %arg22: memref<16x32xf32, #tpu.memory_space<vmem>>, %arg23: memref<16x96xf32, #tpu.memory_space<vmem>>) attributes {dimension_semantics = [#tpu.dimension_semantics<arbitrary>], iteration_bounds = array<i64: 2>, scalar_prefetch = 0 : i64, scratch_operands = 2 : i64, tpu.core_type = #tpu.core_type<tc>, window_params = [{pipeline_mode = #tpu.pipeline_mode<synchronous>, transform_indices = @transform_0, window_bounds = array<i64: 16, 32>}, {pipeline_mode = #tpu.pipeline_mode<synchronous>, transform_indices = @transform_1, window_bounds = array<i64: 2, 8>}, {pipeline_mode = #tpu.pipeline_mode<synchronous>, transform_indices = @transform_2, window_bounds = array<i64: 1, 32>}, {pipeline_mode = #tpu.pipeline_mode<synchronous>, transform_indices = @transform_3, window_bounds = array<i64: 1, 32>}, {transform_indices = @transform_4, window_bounds = array<i64: 1, 32, 96>}, {transform_indices = @transform_5, window_bounds = array<i64: 1, 1, 96>}, {transform_indices = @transform_6, window_bounds = array<i64: 1, 32, 32>}, {transform_indices = @transform_7, window_bounds = array<i64: 1, 1, 32>}, {transform_indices = @transform_8, window_bounds = array<i64: 1, 1, 32>}, {transform_indices = @transform_9, window_bounds = array<i64: 1, 1, 32>}, {transform_indices = @transform_10, window_bounds = array<i64: 1, 32, 64>}, {transform_indices = @transform_11, window_bounds = array<i64: 1, 1, 64>}, {transform_indices = @transform_12, window_bounds = array<i64: 1, 64, 32>}, {transform_indices = @transform_13, window_bounds = array<i64: 1, 1, 32>}, {transform_indices = @transform_14, window_bounds = array<i64: 1, 1, 32>}, {transform_indices = @transform_15, window_bounds = array<i64: 1, 1, 32>}, {pipeline_mode = #tpu.pipeline_mode<synchronous>, transform_indices = @transform_16, window_bounds = array<i64: 32, 32>}, {pipeline_mode = #tpu.pipeline_mode<synchronous>, transform_indices = @transform_17, window_bounds = array<i64: 1, 32>}, {pipeline_mode = #tpu.pipeline_mode<synchronous>, transform_indices = @transform_18, window_bounds = array<i64: 32, 1>}, {pipeline_mode = #tpu.pipeline_mode<synchronous>, transform_indices = @transform_19, window_bounds = array<i64: 1, 1>}, {pipeline_mode = #tpu.pipeline_mode<synchronous>, transform_indices = @transform_20, window_bounds = array<i64: 2, 1>}]} {
    %c0_i32 = arith.constant 0 : i32
    %0 = arith.cmpi eq, %arg0, %c0_i32 : i32
    %1 = arith.extui %0 : i1 to i32
    %c0_i32_0 = arith.constant 0 : i32
    %2 = arith.cmpi ne, %1, %c0_i32_0 : i32
    scf.if %2 {
      %c0_144 = arith.constant 0 : index
      %c0_145 = arith.constant 0 : index
      %277 = vector.load %arg1[%c0_144, %c0_145] : memref<16x32xf32, #tpu.memory_space<vmem>>, vector<16x32xf32>
      %c0_146 = arith.constant 0 : index
      %c0_147 = arith.constant 0 : index
      %278 = vector.load %arg3[%c0_146, %c0_147] : memref<1x32xf32, #tpu.memory_space<vmem>>, vector<1x32xf32>
      %c0_148 = arith.constant 0 : index
      %c0_149 = arith.constant 0 : index
      %279 = vector.load %arg4[%c0_148, %c0_149] : memref<1x32xf32, #tpu.memory_space<vmem>>, vector<1x32xf32>
      %cst_150 = arith.constant dense<0.000000e+00> : vector<16xf32>
      %280 = vector.multi_reduction <add>, %277, %cst_150 [1] : vector<16x32xf32> to vector<16xf32>
      %281 = vector.shape_cast %280 : vector<16xf32> to vector<16x1xf32>
      %cst_151 = arith.constant 3.200000e+01 : f32
      %282 = vector.broadcast %cst_151 : f32 to vector<16x1xf32>
      %283 = arith.divf %281, %282 : vector<16x1xf32>
      %284 = vector.broadcast %283 : vector<16x1xf32> to vector<16x32xf32>
      %285 = arith.subf %277, %284 : vector<16x32xf32>
      %286 = arith.mulf %285, %285 : vector<16x32xf32>
      %cst_152 = arith.constant dense<0.000000e+00> : vector<16xf32>
      %287 = vector.multi_reduction <add>, %286, %cst_152 [1] : vector<16x32xf32> to vector<16xf32>
      %288 = vector.shape_cast %287 : vector<16xf32> to vector<16x1xf32>
      %cst_153 = arith.constant 3.200000e+01 : f32
      %289 = vector.broadcast %cst_153 : f32 to vector<16x1xf32>
      %290 = arith.divf %288, %289 : vector<16x1xf32>
      %291 = vector.broadcast %283 : vector<16x1xf32> to vector<16x32xf32>
      %292 = arith.subf %277, %291 : vector<16x32xf32>
      %cst_154 = arith.constant 9.99999996E-13 : f32
      %293 = vector.broadcast %cst_154 : f32 to vector<16x1xf32>
      %294 = arith.addf %290, %293 : vector<16x1xf32>
      %295 = math.rsqrt %294 : vector<16x1xf32>
      %296 = vector.broadcast %295 : vector<16x1xf32> to vector<16x32xf32>
      %297 = arith.mulf %292, %296 : vector<16x32xf32>
      %298 = vector.broadcast %278 : vector<1x32xf32> to vector<16x32xf32>
      %299 = arith.mulf %297, %298 : vector<16x32xf32>
      %300 = vector.broadcast %279 : vector<1x32xf32> to vector<16x32xf32>
      %301 = arith.addf %299, %300 : vector<16x32xf32>
      %c0_155 = arith.constant 0 : index
      %c0_156 = arith.constant 0 : index
      %302 = vector.load %arg22[%c0_155, %c0_156] : memref<16x32xf32, #tpu.memory_space<vmem>>, vector<16x32xf32>
      tpu.vector_store %arg22[%c0_155, %c0_156], %301 {strides = array<i32>} : memref<16x32xf32, #tpu.memory_space<vmem>>, vector<16x32xf32>,
    } else {
    }
    %c0 = arith.constant 0 : index
    %c0_1 = arith.constant 0 : index
    %3 = vector.load %arg22[%c0, %c0_1] : memref<16x32xf32, #tpu.memory_space<vmem>>, vector<16x32xf32>
    %c0_2 = arith.constant 0 : index
    %c0_3 = arith.constant 0 : index
    %c0_4 = arith.constant 0 : index
    %4 = vector.load %arg5[%c0_2, %c0_3, %c0_4] : memref<1x32x96xf32, #tpu.memory_space<vmem>>, vector<1x32x96xf32>
    %5 = vector.shape_cast %4 : vector<1x32x96xf32> to vector<32x96xf32>
    %cst = arith.constant dense<0.000000e+00> : vector<16x96xf32>
    %6 = tpu.matmul %3, %5, %cst {dimension_numbers = #tpu.dot_dimension_numbers<[1], [0], [0], [1], [0, 0, 1, 1], [], []>} : vector<16x32xf32>, vector<32x96xf32>, vector<16x96xf32> -> vector<16x96xf32>
    %c0_5 = arith.constant 0 : index
    %c0_6 = arith.constant 0 : index
    %c0_7 = arith.constant 0 : index
    %7 = vector.load %arg6[%c0_5, %c0_6, %c0_7] : memref<1x1x96xf32, #tpu.memory_space<vmem>>, vector<1x1x96xf32>
    %8 = vector.shape_cast %7 : vector<1x1x96xf32> to vector<1x96xf32>
    %9 = vector.broadcast %8 : vector<1x96xf32> to vector<16x96xf32>
    %10 = arith.addf %6, %9 : vector<16x96xf32>
    %c0_8 = arith.constant 0 : index
    %c0_9 = arith.constant 0 : index
    %11 = vector.load %arg23[%c0_8, %c0_9] : memref<16x96xf32, #tpu.memory_space<vmem>>, vector<16x96xf32>
    tpu.vector_store %arg23[%c0_8, %c0_9], %10 {strides = array<i32>} : memref<16x96xf32, #tpu.memory_space<vmem>>, vector<16x96xf32>,
    %c0_10 = arith.constant 0 : index
    %c0_11 = arith.constant 0 : index
    %12 = vector.load %arg2[%c0_10, %c0_11] : memref<2x8xf32, #tpu.memory_space<vmem>>, vector<1x8xf32>
    %cst_12 = arith.constant 1.000000e+00 : f32
    %13 = vector.broadcast %cst_12 : f32 to vector<1x8xf32>
    %14 = arith.subf %13, %12 : vector<1x8xf32>
    %cst_13 = arith.constant -1.000000e+09 : f32
    %15 = vector.broadcast %cst_13 : f32 to vector<1x8xf32>
    %16 = arith.mulf %14, %15 : vector<1x8xf32>
    %c0_14 = arith.constant 0 : index
    %c0_15 = arith.constant 0 : index
    %17 = vector.load %arg23[%c0_14, %c0_15] : memref<16x96xf32, #tpu.memory_space<vmem>>, vector<8x8xf32>
    %c0_16 = arith.constant 0 : index
    %c32 = arith.constant 32 : index
    %18 = vector.load %arg23[%c0_16, %c32] : memref<16x96xf32, #tpu.memory_space<vmem>>, vector<8x8xf32>
    %c0_17 = arith.constant 0 : index
    %c64 = arith.constant 64 : index
    %19 = vector.load %arg23[%c0_17, %c64] : memref<16x96xf32, #tpu.memory_space<vmem>>, vector<8x8xf32>
    %20 = tpu.transpose %18, [1, 0] : vector<8x8xf32> -> vector<8x8xf32>
    %cst_18 = arith.constant dense<0.000000e+00> : vector<8x8xf32>
    %21 = tpu.matmul %17, %20, %cst_18 {dimension_numbers = #tpu.dot_dimension_numbers<[1], [0], [0], [1], [0, 0, 1, 1], [], []>} : vector<8x8xf32>, vector<8x8xf32>, vector<8x8xf32> -> vector<8x8xf32>
    %cst_19 = arith.constant 0.353553385 : f32
    %22 = vector.broadcast %cst_19 : f32 to vector<8x8xf32>
    %23 = arith.mulf %21, %22 : vector<8x8xf32>
    %24 = vector.broadcast %16 : vector<1x8xf32> to vector<8x8xf32>
    %25 = arith.addf %23, %24 : vector<8x8xf32>
    %cst_20 = arith.constant dense<0xFF800000> : vector<8xf32>
    %26 = vector.multi_reduction <maximumf>, %25, %cst_20 [1] : vector<8x8xf32> to vector<8xf32>
    %27 = vector.shape_cast %26 : vector<8xf32> to vector<8x1xf32>
    %28 = vector.broadcast %27 : vector<8x1xf32> to vector<8x8xf32>
    %29 = arith.subf %25, %28 : vector<8x8xf32>
    %30 = math.exp %29 : vector<8x8xf32>
    %cst_21 = arith.constant dense<0.000000e+00> : vector<8xf32>
    %31 = vector.multi_reduction <add>, %30, %cst_21 [1] : vector<8x8xf32> to vector<8xf32>
    %32 = vector.shape_cast %31 : vector<8xf32> to vector<8x1xf32>
    %33 = tpu.reciprocal %32 {approx = true} : vector<8x1xf32> -> vector<8x1xf32>
    %34 = vector.broadcast %33 : vector<8x1xf32> to vector<8x8xf32>
    %35 = arith.mulf %30, %34 : vector<8x8xf32>
    %cst_22 = arith.constant dense<0.000000e+00> : vector<8x8xf32>
    %36 = tpu.matmul %35, %19, %cst_22 {dimension_numbers = #tpu.dot_dimension_numbers<[1], [0], [0], [1], [0, 0, 1, 1], [], []>} : vector<8x8xf32>, vector<8x8xf32>, vector<8x8xf32> -> vector<8x8xf32>
    %c0_23 = arith.constant 0 : index
    %c8 = arith.constant 8 : index
    %37 = vector.load %arg23[%c0_23, %c8] : memref<16x96xf32, #tpu.memory_space<vmem>>, vector<8x8xf32>
    %c0_24 = arith.constant 0 : index
    %c40 = arith.constant 40 : index
    %38 = vector.load %arg23[%c0_24, %c40] : memref<16x96xf32, #tpu.memory_space<vmem>>, vector<8x8xf32>
    %c0_25 = arith.constant 0 : index
    %c72 = arith.constant 72 : index
    %39 = vector.load %arg23[%c0_25, %c72] : memref<16x96xf32, #tpu.memory_space<vmem>>, vector<8x8xf32>
    %40 = tpu.transpose %38, [1, 0] : vector<8x8xf32> -> vector<8x8xf32>
    %cst_26 = arith.constant dense<0.000000e+00> : vector<8x8xf32>
    %41 = tpu.matmul %37, %40, %cst_26 {dimension_numbers = #tpu.dot_dimension_numbers<[1], [0], [0], [1], [0, 0, 1, 1], [], []>} : vector<8x8xf32>, vector<8x8xf32>, vector<8x8xf32> -> vector<8x8xf32>
    %cst_27 = arith.constant 0.353553385 : f32
    %42 = vector.broadcast %cst_27 : f32 to vector<8x8xf32>
    %43 = arith.mulf %41, %42 : vector<8x8xf32>
    %44 = vector.broadcast %16 : vector<1x8xf32> to vector<8x8xf32>
    %45 = arith.addf %43, %44 : vector<8x8xf32>
    %cst_28 = arith.constant dense<0xFF800000> : vector<8xf32>
    %46 = vector.multi_reduction <maximumf>, %45, %cst_28 [1] : vector<8x8xf32> to vector<8xf32>
    %47 = vector.shape_cast %46 : vector<8xf32> to vector<8x1xf32>
    %48 = vector.broadcast %47 : vector<8x1xf32> to vector<8x8xf32>
    %49 = arith.subf %45, %48 : vector<8x8xf32>
    %50 = math.exp %49 : vector<8x8xf32>
    %cst_29 = arith.constant dense<0.000000e+00> : vector<8xf32>
    %51 = vector.multi_reduction <add>, %50, %cst_29 [1] : vector<8x8xf32> to vector<8xf32>
    %52 = vector.shape_cast %51 : vector<8xf32> to vector<8x1xf32>
    %53 = tpu.reciprocal %52 {approx = true} : vector<8x1xf32> -> vector<8x1xf32>
    %54 = vector.broadcast %53 : vector<8x1xf32> to vector<8x8xf32>
    %55 = arith.mulf %50, %54 : vector<8x8xf32>
    %cst_30 = arith.constant dense<0.000000e+00> : vector<8x8xf32>
    %56 = tpu.matmul %55, %39, %cst_30 {dimension_numbers = #tpu.dot_dimension_numbers<[1], [0], [0], [1], [0, 0, 1, 1], [], []>} : vector<8x8xf32>, vector<8x8xf32>, vector<8x8xf32> -> vector<8x8xf32>
    %c0_31 = arith.constant 0 : index
    %c16 = arith.constant 16 : index
    %57 = vector.load %arg23[%c0_31, %c16] : memref<16x96xf32, #tpu.memory_space<vmem>>, vector<8x8xf32>
    %c0_32 = arith.constant 0 : index
    %c48 = arith.constant 48 : index
    %58 = vector.load %arg23[%c0_32, %c48] : memref<16x96xf32, #tpu.memory_space<vmem>>, vector<8x8xf32>
    %c0_33 = arith.constant 0 : index
    %c80 = arith.constant 80 : index
    %59 = vector.load %arg23[%c0_33, %c80] : memref<16x96xf32, #tpu.memory_space<vmem>>, vector<8x8xf32>
    %60 = tpu.transpose %58, [1, 0] : vector<8x8xf32> -> vector<8x8xf32>
    %cst_34 = arith.constant dense<0.000000e+00> : vector<8x8xf32>
    %61 = tpu.matmul %57, %60, %cst_34 {dimension_numbers = #tpu.dot_dimension_numbers<[1], [0], [0], [1], [0, 0, 1, 1], [], []>} : vector<8x8xf32>, vector<8x8xf32>, vector<8x8xf32> -> vector<8x8xf32>
    %cst_35 = arith.constant 0.353553385 : f32
    %62 = vector.broadcast %cst_35 : f32 to vector<8x8xf32>
    %63 = arith.mulf %61, %62 : vector<8x8xf32>
    %64 = vector.broadcast %16 : vector<1x8xf32> to vector<8x8xf32>
    %65 = arith.addf %63, %64 : vector<8x8xf32>
    %cst_36 = arith.constant dense<0xFF800000> : vector<8xf32>
    %66 = vector.multi_reduction <maximumf>, %65, %cst_36 [1] : vector<8x8xf32> to vector<8xf32>
    %67 = vector.shape_cast %66 : vector<8xf32> to vector<8x1xf32>
    %68 = vector.broadcast %67 : vector<8x1xf32> to vector<8x8xf32>
    %69 = arith.subf %65, %68 : vector<8x8xf32>
    %70 = math.exp %69 : vector<8x8xf32>
    %cst_37 = arith.constant dense<0.000000e+00> : vector<8xf32>
    %71 = vector.multi_reduction <add>, %70, %cst_37 [1] : vector<8x8xf32> to vector<8xf32>
    %72 = vector.shape_cast %71 : vector<8xf32> to vector<8x1xf32>
    %73 = tpu.reciprocal %72 {approx = true} : vector<8x1xf32> -> vector<8x1xf32>
    %74 = vector.broadcast %73 : vector<8x1xf32> to vector<8x8xf32>
    %75 = arith.mulf %70, %74 : vector<8x8xf32>
    %cst_38 = arith.constant dense<0.000000e+00> : vector<8x8xf32>
    %76 = tpu.matmul %75, %59, %cst_38 {dimension_numbers = #tpu.dot_dimension_numbers<[1], [0], [0], [1], [0, 0, 1, 1], [], []>} : vector<8x8xf32>, vector<8x8xf32>, vector<8x8xf32> -> vector<8x8xf32>
    %c0_39 = arith.constant 0 : index
    %c24 = arith.constant 24 : index
    %77 = vector.load %arg23[%c0_39, %c24] : memref<16x96xf32, #tpu.memory_space<vmem>>, vector<8x8xf32>
    %c0_40 = arith.constant 0 : index
    %c56 = arith.constant 56 : index
    %78 = vector.load %arg23[%c0_40, %c56] : memref<16x96xf32, #tpu.memory_space<vmem>>, vector<8x8xf32>
    %c0_41 = arith.constant 0 : index
    %c88 = arith.constant 88 : index
    %79 = vector.load %arg23[%c0_41, %c88] : memref<16x96xf32, #tpu.memory_space<vmem>>, vector<8x8xf32>
    %80 = tpu.transpose %78, [1, 0] : vector<8x8xf32> -> vector<8x8xf32>
    %cst_42 = arith.constant dense<0.000000e+00> : vector<8x8xf32>
    %81 = tpu.matmul %77, %80, %cst_42 {dimension_numbers = #tpu.dot_dimension_numbers<[1], [0], [0], [1], [0, 0, 1, 1], [], []>} : vector<8x8xf32>, vector<8x8xf32>, vector<8x8xf32> -> vector<8x8xf32>
    %cst_43 = arith.constant 0.353553385 : f32
    %82 = vector.broadcast %cst_43 : f32 to vector<8x8xf32>
    %83 = arith.mulf %81, %82 : vector<8x8xf32>
    %84 = vector.broadcast %16 : vector<1x8xf32> to vector<8x8xf32>
    %85 = arith.addf %83, %84 : vector<8x8xf32>
    %cst_44 = arith.constant dense<0xFF800000> : vector<8xf32>
    %86 = vector.multi_reduction <maximumf>, %85, %cst_44 [1] : vector<8x8xf32> to vector<8xf32>
    %87 = vector.shape_cast %86 : vector<8xf32> to vector<8x1xf32>
    %88 = vector.broadcast %87 : vector<8x1xf32> to vector<8x8xf32>
    %89 = arith.subf %85, %88 : vector<8x8xf32>
    %90 = math.exp %89 : vector<8x8xf32>
    %cst_45 = arith.constant dense<0.000000e+00> : vector<8xf32>
    %91 = vector.multi_reduction <add>, %90, %cst_45 [1] : vector<8x8xf32> to vector<8xf32>
    %92 = vector.shape_cast %91 : vector<8xf32> to vector<8x1xf32>
    %93 = tpu.reciprocal %92 {approx = true} : vector<8x1xf32> -> vector<8x1xf32>
    %94 = vector.broadcast %93 : vector<8x1xf32> to vector<8x8xf32>
    %95 = arith.mulf %90, %94 : vector<8x8xf32>
    %cst_46 = arith.constant dense<0.000000e+00> : vector<8x8xf32>
    %96 = tpu.matmul %95, %79, %cst_46 {dimension_numbers = #tpu.dot_dimension_numbers<[1], [0], [0], [1], [0, 0, 1, 1], [], []>} : vector<8x8xf32>, vector<8x8xf32>, vector<8x8xf32> -> vector<8x8xf32>
    %97 = tpu.concatenate %36, %56, %76, %96 in 1 : vector<8x8xf32>, vector<8x8xf32>, vector<8x8xf32>, vector<8x8xf32> -> vector<8x32xf32>
    %c1 = arith.constant 1 : index
    %c0_47 = arith.constant 0 : index
    %98 = vector.load %arg2[%c1, %c0_47] : memref<2x8xf32, #tpu.memory_space<vmem>>, vector<1x8xf32>
    %cst_48 = arith.constant 1.000000e+00 : f32
    %99 = vector.broadcast %cst_48 : f32 to vector<1x8xf32>
    %100 = arith.subf %99, %98 : vector<1x8xf32>
    %cst_49 = arith.constant -1.000000e+09 : f32
    %101 = vector.broadcast %cst_49 : f32 to vector<1x8xf32>
    %102 = arith.mulf %100, %101 : vector<1x8xf32>
    %c8_50 = arith.constant 8 : index
    %c0_51 = arith.constant 0 : index
    %103 = vector.load %arg23[%c8_50, %c0_51] : memref<16x96xf32, #tpu.memory_space<vmem>>, vector<8x8xf32>
    %c8_52 = arith.constant 8 : index
    %c32_53 = arith.constant 32 : index
    %104 = vector.load %arg23[%c8_52, %c32_53] : memref<16x96xf32, #tpu.memory_space<vmem>>, vector<8x8xf32>
    %c8_54 = arith.constant 8 : index
    %c64_55 = arith.constant 64 : index
    %105 = vector.load %arg23[%c8_54, %c64_55] : memref<16x96xf32, #tpu.memory_space<vmem>>, vector<8x8xf32>
    %106 = tpu.transpose %104, [1, 0] : vector<8x8xf32> -> vector<8x8xf32>
    %cst_56 = arith.constant dense<0.000000e+00> : vector<8x8xf32>
    %107 = tpu.matmul %103, %106, %cst_56 {dimension_numbers = #tpu.dot_dimension_numbers<[1], [0], [0], [1], [0, 0, 1, 1], [], []>} : vector<8x8xf32>, vector<8x8xf32>, vector<8x8xf32> -> vector<8x8xf32>
    %cst_57 = arith.constant 0.353553385 : f32
    %108 = vector.broadcast %cst_57 : f32 to vector<8x8xf32>
    %109 = arith.mulf %107, %108 : vector<8x8xf32>
    %110 = vector.broadcast %102 : vector<1x8xf32> to vector<8x8xf32>
    %111 = arith.addf %109, %110 : vector<8x8xf32>
    %cst_58 = arith.constant dense<0xFF800000> : vector<8xf32>
    %112 = vector.multi_reduction <maximumf>, %111, %cst_58 [1] : vector<8x8xf32> to vector<8xf32>
    %113 = vector.shape_cast %112 : vector<8xf32> to vector<8x1xf32>
    %114 = vector.broadcast %113 : vector<8x1xf32> to vector<8x8xf32>
    %115 = arith.subf %111, %114 : vector<8x8xf32>
    %116 = math.exp %115 : vector<8x8xf32>
    %cst_59 = arith.constant dense<0.000000e+00> : vector<8xf32>
    %117 = vector.multi_reduction <add>, %116, %cst_59 [1] : vector<8x8xf32> to vector<8xf32>
    %118 = vector.shape_cast %117 : vector<8xf32> to vector<8x1xf32>
    %119 = tpu.reciprocal %118 {approx = true} : vector<8x1xf32> -> vector<8x1xf32>
    %120 = vector.broadcast %119 : vector<8x1xf32> to vector<8x8xf32>
    %121 = arith.mulf %116, %120 : vector<8x8xf32>
    %cst_60 = arith.constant dense<0.000000e+00> : vector<8x8xf32>
    %122 = tpu.matmul %121, %105, %cst_60 {dimension_numbers = #tpu.dot_dimension_numbers<[1], [0], [0], [1], [0, 0, 1, 1], [], []>} : vector<8x8xf32>, vector<8x8xf32>, vector<8x8xf32> -> vector<8x8xf32>
    %c8_61 = arith.constant 8 : index
    %c8_62 = arith.constant 8 : index
    %123 = vector.load %arg23[%c8_61, %c8_62] : memref<16x96xf32, #tpu.memory_space<vmem>>, vector<8x8xf32>
    %c8_63 = arith.constant 8 : index
    %c40_64 = arith.constant 40 : index
    %124 = vector.load %arg23[%c8_63, %c40_64] : memref<16x96xf32, #tpu.memory_space<vmem>>, vector<8x8xf32>
    %c8_65 = arith.constant 8 : index
    %c72_66 = arith.constant 72 : index
    %125 = vector.load %arg23[%c8_65, %c72_66] : memref<16x96xf32, #tpu.memory_space<vmem>>, vector<8x8xf32>
    %126 = tpu.transpose %124, [1, 0] : vector<8x8xf32> -> vector<8x8xf32>
    %cst_67 = arith.constant dense<0.000000e+00> : vector<8x8xf32>
    %127 = tpu.matmul %123, %126, %cst_67 {dimension_numbers = #tpu.dot_dimension_numbers<[1], [0], [0], [1], [0, 0, 1, 1], [], []>} : vector<8x8xf32>, vector<8x8xf32>, vector<8x8xf32> -> vector<8x8xf32>
    %cst_68 = arith.constant 0.353553385 : f32
    %128 = vector.broadcast %cst_68 : f32 to vector<8x8xf32>
    %129 = arith.mulf %127, %128 : vector<8x8xf32>
    %130 = vector.broadcast %102 : vector<1x8xf32> to vector<8x8xf32>
    %131 = arith.addf %129, %130 : vector<8x8xf32>
    %cst_69 = arith.constant dense<0xFF800000> : vector<8xf32>
    %132 = vector.multi_reduction <maximumf>, %131, %cst_69 [1] : vector<8x8xf32> to vector<8xf32>
    %133 = vector.shape_cast %132 : vector<8xf32> to vector<8x1xf32>
    %134 = vector.broadcast %133 : vector<8x1xf32> to vector<8x8xf32>
    %135 = arith.subf %131, %134 : vector<8x8xf32>
    %136 = math.exp %135 : vector<8x8xf32>
    %cst_70 = arith.constant dense<0.000000e+00> : vector<8xf32>
    %137 = vector.multi_reduction <add>, %136, %cst_70 [1] : vector<8x8xf32> to vector<8xf32>
    %138 = vector.shape_cast %137 : vector<8xf32> to vector<8x1xf32>
    %139 = tpu.reciprocal %138 {approx = true} : vector<8x1xf32> -> vector<8x1xf32>
    %140 = vector.broadcast %139 : vector<8x1xf32> to vector<8x8xf32>
    %141 = arith.mulf %136, %140 : vector<8x8xf32>
    %cst_71 = arith.constant dense<0.000000e+00> : vector<8x8xf32>
    %142 = tpu.matmul %141, %125, %cst_71 {dimension_numbers = #tpu.dot_dimension_numbers<[1], [0], [0], [1], [0, 0, 1, 1], [], []>} : vector<8x8xf32>, vector<8x8xf32>, vector<8x8xf32> -> vector<8x8xf32>
    %c8_72 = arith.constant 8 : index
    %c16_73 = arith.constant 16 : index
    %143 = vector.load %arg23[%c8_72, %c16_73] : memref<16x96xf32, #tpu.memory_space<vmem>>, vector<8x8xf32>
    %c8_74 = arith.constant 8 : index
    %c48_75 = arith.constant 48 : index
    %144 = vector.load %arg23[%c8_74, %c48_75] : memref<16x96xf32, #tpu.memory_space<vmem>>, vector<8x8xf32>
    %c8_76 = arith.constant 8 : index
    %c80_77 = arith.constant 80 : index
    %145 = vector.load %arg23[%c8_76, %c80_77] : memref<16x96xf32, #tpu.memory_space<vmem>>, vector<8x8xf32>
    %146 = tpu.transpose %144, [1, 0] : vector<8x8xf32> -> vector<8x8xf32>
    %cst_78 = arith.constant dense<0.000000e+00> : vector<8x8xf32>
    %147 = tpu.matmul %143, %146, %cst_78 {dimension_numbers = #tpu.dot_dimension_numbers<[1], [0], [0], [1], [0, 0, 1, 1], [], []>} : vector<8x8xf32>, vector<8x8xf32>, vector<8x8xf32> -> vector<8x8xf32>
    %cst_79 = arith.constant 0.353553385 : f32
    %148 = vector.broadcast %cst_79 : f32 to vector<8x8xf32>
    %149 = arith.mulf %147, %148 : vector<8x8xf32>
    %150 = vector.broadcast %102 : vector<1x8xf32> to vector<8x8xf32>
    %151 = arith.addf %149, %150 : vector<8x8xf32>
    %cst_80 = arith.constant dense<0xFF800000> : vector<8xf32>
    %152 = vector.multi_reduction <maximumf>, %151, %cst_80 [1] : vector<8x8xf32> to vector<8xf32>
    %153 = vector.shape_cast %152 : vector<8xf32> to vector<8x1xf32>
    %154 = vector.broadcast %153 : vector<8x1xf32> to vector<8x8xf32>
    %155 = arith.subf %151, %154 : vector<8x8xf32>
    %156 = math.exp %155 : vector<8x8xf32>
    %cst_81 = arith.constant dense<0.000000e+00> : vector<8xf32>
    %157 = vector.multi_reduction <add>, %156, %cst_81 [1] : vector<8x8xf32> to vector<8xf32>
    %158 = vector.shape_cast %157 : vector<8xf32> to vector<8x1xf32>
    %159 = tpu.reciprocal %158 {approx = true} : vector<8x1xf32> -> vector<8x1xf32>
    %160 = vector.broadcast %159 : vector<8x1xf32> to vector<8x8xf32>
    %161 = arith.mulf %156, %160 : vector<8x8xf32>
    %cst_82 = arith.constant dense<0.000000e+00> : vector<8x8xf32>
    %162 = tpu.matmul %161, %145, %cst_82 {dimension_numbers = #tpu.dot_dimension_numbers<[1], [0], [0], [1], [0, 0, 1, 1], [], []>} : vector<8x8xf32>, vector<8x8xf32>, vector<8x8xf32> -> vector<8x8xf32>
    %c8_83 = arith.constant 8 : index
    %c24_84 = arith.constant 24 : index
    %163 = vector.load %arg23[%c8_83, %c24_84] : memref<16x96xf32, #tpu.memory_space<vmem>>, vector<8x8xf32>
    %c8_85 = arith.constant 8 : index
    %c56_86 = arith.constant 56 : index
    %164 = vector.load %arg23[%c8_85, %c56_86] : memref<16x96xf32, #tpu.memory_space<vmem>>, vector<8x8xf32>
    %c8_87 = arith.constant 8 : index
    %c88_88 = arith.constant 88 : index
    %165 = vector.load %arg23[%c8_87, %c88_88] : memref<16x96xf32, #tpu.memory_space<vmem>>, vector<8x8xf32>
    %166 = tpu.transpose %164, [1, 0] : vector<8x8xf32> -> vector<8x8xf32>
    %cst_89 = arith.constant dense<0.000000e+00> : vector<8x8xf32>
    %167 = tpu.matmul %163, %166, %cst_89 {dimension_numbers = #tpu.dot_dimension_numbers<[1], [0], [0], [1], [0, 0, 1, 1], [], []>} : vector<8x8xf32>, vector<8x8xf32>, vector<8x8xf32> -> vector<8x8xf32>
    %cst_90 = arith.constant 0.353553385 : f32
    %168 = vector.broadcast %cst_90 : f32 to vector<8x8xf32>
    %169 = arith.mulf %167, %168 : vector<8x8xf32>
    %170 = vector.broadcast %102 : vector<1x8xf32> to vector<8x8xf32>
    %171 = arith.addf %169, %170 : vector<8x8xf32>
    %cst_91 = arith.constant dense<0xFF800000> : vector<8xf32>
    %172 = vector.multi_reduction <maximumf>, %171, %cst_91 [1] : vector<8x8xf32> to vector<8xf32>
    %173 = vector.shape_cast %172 : vector<8xf32> to vector<8x1xf32>
    %174 = vector.broadcast %173 : vector<8x1xf32> to vector<8x8xf32>
    %175 = arith.subf %171, %174 : vector<8x8xf32>
    %176 = math.exp %175 : vector<8x8xf32>
    %cst_92 = arith.constant dense<0.000000e+00> : vector<8xf32>
    %177 = vector.multi_reduction <add>, %176, %cst_92 [1] : vector<8x8xf32> to vector<8xf32>
    %178 = vector.shape_cast %177 : vector<8xf32> to vector<8x1xf32>
    %179 = tpu.reciprocal %178 {approx = true} : vector<8x1xf32> -> vector<8x1xf32>
    %180 = vector.broadcast %179 : vector<8x1xf32> to vector<8x8xf32>
    %181 = arith.mulf %176, %180 : vector<8x8xf32>
    %cst_93 = arith.constant dense<0.000000e+00> : vector<8x8xf32>
    %182 = tpu.matmul %181, %165, %cst_93 {dimension_numbers = #tpu.dot_dimension_numbers<[1], [0], [0], [1], [0, 0, 1, 1], [], []>} : vector<8x8xf32>, vector<8x8xf32>, vector<8x8xf32> -> vector<8x8xf32>
    %183 = tpu.concatenate %122, %142, %162, %182 in 1 : vector<8x8xf32>, vector<8x8xf32>, vector<8x8xf32>, vector<8x8xf32> -> vector<8x32xf32>
    %184 = tpu.concatenate %97, %183 in 0 : vector<8x32xf32>, vector<8x32xf32> -> vector<16x32xf32>
    %c0_94 = arith.constant 0 : index
    %c0_95 = arith.constant 0 : index
    %c0_96 = arith.constant 0 : index
    %185 = vector.load %arg7[%c0_94, %c0_95, %c0_96] : memref<1x32x32xf32, #tpu.memory_space<vmem>>, vector<1x32x32xf32>
    %186 = vector.shape_cast %185 : vector<1x32x32xf32> to vector<32x32xf32>
    %cst_97 = arith.constant dense<0.000000e+00> : vector<16x32xf32>
    %187 = tpu.matmul %184, %186, %cst_97 {dimension_numbers = #tpu.dot_dimension_numbers<[1], [0], [0], [1], [0, 0, 1, 1], [], []>} : vector<16x32xf32>, vector<32x32xf32>, vector<16x32xf32> -> vector<16x32xf32>
    %c0_98 = arith.constant 0 : index
    %c0_99 = arith.constant 0 : index
    %c0_100 = arith.constant 0 : index
    %188 = vector.load %arg8[%c0_98, %c0_99, %c0_100] : memref<1x1x32xf32, #tpu.memory_space<vmem>>, vector<1x1x32xf32>
    %189 = vector.shape_cast %188 : vector<1x1x32xf32> to vector<1x32xf32>
    %190 = vector.broadcast %189 : vector<1x32xf32> to vector<16x32xf32>
    %191 = arith.addf %187, %190 : vector<16x32xf32>
    %192 = arith.addf %191, %3 : vector<16x32xf32>
    %c0_101 = arith.constant 0 : index
    %c0_102 = arith.constant 0 : index
    %c0_103 = arith.constant 0 : index
    %193 = vector.load %arg9[%c0_101, %c0_102, %c0_103] : memref<1x1x32xf32, #tpu.memory_space<vmem>>, vector<1x1x32xf32>
    %194 = vector.shape_cast %193 : vector<1x1x32xf32> to vector<1x32xf32>
    %c0_104 = arith.constant 0 : index
    %c0_105 = arith.constant 0 : index
    %c0_106 = arith.constant 0 : index
    %195 = vector.load %arg10[%c0_104, %c0_105, %c0_106] : memref<1x1x32xf32, #tpu.memory_space<vmem>>, vector<1x1x32xf32>
    %196 = vector.shape_cast %195 : vector<1x1x32xf32> to vector<1x32xf32>
    %cst_107 = arith.constant dense<0.000000e+00> : vector<16xf32>
    %197 = vector.multi_reduction <add>, %192, %cst_107 [1] : vector<16x32xf32> to vector<16xf32>
    %198 = vector.shape_cast %197 : vector<16xf32> to vector<16x1xf32>
    %cst_108 = arith.constant 3.200000e+01 : f32
    %199 = vector.broadcast %cst_108 : f32 to vector<16x1xf32>
    %200 = arith.divf %198, %199 : vector<16x1xf32>
    %201 = vector.broadcast %200 : vector<16x1xf32> to vector<16x32xf32>
    %202 = arith.subf %192, %201 : vector<16x32xf32>
    %203 = arith.mulf %202, %202 : vector<16x32xf32>
    %cst_109 = arith.constant dense<0.000000e+00> : vector<16xf32>
    %204 = vector.multi_reduction <add>, %203, %cst_109 [1] : vector<16x32xf32> to vector<16xf32>
    %205 = vector.shape_cast %204 : vector<16xf32> to vector<16x1xf32>
    %cst_110 = arith.constant 3.200000e+01 : f32
    %206 = vector.broadcast %cst_110 : f32 to vector<16x1xf32>
    %207 = arith.divf %205, %206 : vector<16x1xf32>
    %208 = vector.broadcast %200 : vector<16x1xf32> to vector<16x32xf32>
    %209 = arith.subf %192, %208 : vector<16x32xf32>
    %cst_111 = arith.constant 9.99999996E-13 : f32
    %210 = vector.broadcast %cst_111 : f32 to vector<16x1xf32>
    %211 = arith.addf %207, %210 : vector<16x1xf32>
    %212 = math.rsqrt %211 : vector<16x1xf32>
    %213 = vector.broadcast %212 : vector<16x1xf32> to vector<16x32xf32>
    %214 = arith.mulf %209, %213 : vector<16x32xf32>
    %215 = vector.broadcast %194 : vector<1x32xf32> to vector<16x32xf32>
    %216 = arith.mulf %214, %215 : vector<16x32xf32>
    %217 = vector.broadcast %196 : vector<1x32xf32> to vector<16x32xf32>
    %218 = arith.addf %216, %217 : vector<16x32xf32>
    %c0_112 = arith.constant 0 : index
    %c0_113 = arith.constant 0 : index
    %c0_114 = arith.constant 0 : index
    %219 = vector.load %arg11[%c0_112, %c0_113, %c0_114] : memref<1x32x64xf32, #tpu.memory_space<vmem>>, vector<1x32x64xf32>
    %220 = vector.shape_cast %219 : vector<1x32x64xf32> to vector<32x64xf32>
    %cst_115 = arith.constant dense<0.000000e+00> : vector<16x64xf32>
    %221 = tpu.matmul %218, %220, %cst_115 {dimension_numbers = #tpu.dot_dimension_numbers<[1], [0], [0], [1], [0, 0, 1, 1], [], []>} : vector<16x32xf32>, vector<32x64xf32>, vector<16x64xf32> -> vector<16x64xf32>
    %c0_116 = arith.constant 0 : index
    %c0_117 = arith.constant 0 : index
    %c0_118 = arith.constant 0 : index
    %222 = vector.load %arg12[%c0_116, %c0_117, %c0_118] : memref<1x1x64xf32, #tpu.memory_space<vmem>>, vector<1x1x64xf32>
    %223 = vector.shape_cast %222 : vector<1x1x64xf32> to vector<1x64xf32>
    %224 = vector.broadcast %223 : vector<1x64xf32> to vector<16x64xf32>
    %225 = arith.addf %221, %224 : vector<16x64xf32>
    %cst_119 = arith.constant 5.000000e-01 : f32
    %226 = vector.broadcast %cst_119 : f32 to vector<16x64xf32>
    %227 = arith.mulf %226, %225 : vector<16x64xf32>
    %cst_120 = arith.constant 4.471500e-02 : f32
    %228 = vector.broadcast %cst_120 : f32 to vector<16x64xf32>
    %229 = arith.mulf %228, %225 : vector<16x64xf32>
    %230 = arith.mulf %229, %225 : vector<16x64xf32>
    %231 = arith.mulf %230, %225 : vector<16x64xf32>
    %232 = arith.addf %225, %231 : vector<16x64xf32>
    %cst_121 = arith.constant 0.797884583 : f32
    %233 = vector.broadcast %cst_121 : f32 to vector<16x64xf32>
    %234 = arith.mulf %233, %232 : vector<16x64xf32>
    %235 = math.tanh %234 : vector<16x64xf32>
    %cst_122 = arith.constant 1.000000e+00 : f32
    %236 = vector.broadcast %cst_122 : f32 to vector<16x64xf32>
    %237 = arith.addf %236, %235 : vector<16x64xf32>
    %238 = arith.mulf %227, %237 : vector<16x64xf32>
    %c0_123 = arith.constant 0 : index
    %c0_124 = arith.constant 0 : index
    %c0_125 = arith.constant 0 : index
    %239 = vector.load %arg13[%c0_123, %c0_124, %c0_125] : memref<1x64x32xf32, #tpu.memory_space<vmem>>, vector<1x64x32xf32>
    %240 = vector.shape_cast %239 : vector<1x64x32xf32> to vector<64x32xf32>
    %cst_126 = arith.constant dense<0.000000e+00> : vector<16x32xf32>
    %241 = tpu.matmul %238, %240, %cst_126 {dimension_numbers = #tpu.dot_dimension_numbers<[1], [0], [0], [1], [0, 0, 1, 1], [], []>} : vector<16x64xf32>, vector<64x32xf32>, vector<16x32xf32> -> vector<16x32xf32>
    %c0_127 = arith.constant 0 : index
    %c0_128 = arith.constant 0 : index
    %c0_129 = arith.constant 0 : index
    %242 = vector.load %arg14[%c0_127, %c0_128, %c0_129] : memref<1x1x32xf32, #tpu.memory_space<vmem>>, vector<1x1x32xf32>
    %243 = vector.shape_cast %242 : vector<1x1x32xf32> to vector<1x32xf32>
    %244 = vector.broadcast %243 : vector<1x32xf32> to vector<16x32xf32>
    %245 = arith.addf %241, %244 : vector<16x32xf32>
    %246 = arith.addf %245, %218 : vector<16x32xf32>
    %c0_130 = arith.constant 0 : index
    %c0_131 = arith.constant 0 : index
    %c0_132 = arith.constant 0 : index
    %247 = vector.load %arg15[%c0_130, %c0_131, %c0_132] : memref<1x1x32xf32, #tpu.memory_space<vmem>>, vector<1x1x32xf32>
    %248 = vector.shape_cast %247 : vector<1x1x32xf32> to vector<1x32xf32>
    %c0_133 = arith.constant 0 : index
    %c0_134 = arith.constant 0 : index
    %c0_135 = arith.constant 0 : index
    %249 = vector.load %arg16[%c0_133, %c0_134, %c0_135] : memref<1x1x32xf32, #tpu.memory_space<vmem>>, vector<1x1x32xf32>
    %250 = vector.shape_cast %249 : vector<1x1x32xf32> to vector<1x32xf32>
    %cst_136 = arith.constant dense<0.000000e+00> : vector<16xf32>
    %251 = vector.multi_reduction <add>, %246, %cst_136 [1] : vector<16x32xf32> to vector<16xf32>
    %252 = vector.shape_cast %251 : vector<16xf32> to vector<16x1xf32>
    %cst_137 = arith.constant 3.200000e+01 : f32
    %253 = vector.broadcast %cst_137 : f32 to vector<16x1xf32>
    %254 = arith.divf %252, %253 : vector<16x1xf32>
    %255 = vector.broadcast %254 : vector<16x1xf32> to vector<16x32xf32>
    %256 = arith.subf %246, %255 : vector<16x32xf32>
    %257 = arith.mulf %256, %256 : vector<16x32xf32>
    %cst_138 = arith.constant dense<0.000000e+00> : vector<16xf32>
    %258 = vector.multi_reduction <add>, %257, %cst_138 [1] : vector<16x32xf32> to vector<16xf32>
    %259 = vector.shape_cast %258 : vector<16xf32> to vector<16x1xf32>
    %cst_139 = arith.constant 3.200000e+01 : f32
    %260 = vector.broadcast %cst_139 : f32 to vector<16x1xf32>
    %261 = arith.divf %259, %260 : vector<16x1xf32>
    %262 = vector.broadcast %254 : vector<16x1xf32> to vector<16x32xf32>
    %263 = arith.subf %246, %262 : vector<16x32xf32>
    %cst_140 = arith.constant 9.99999996E-13 : f32
    %264 = vector.broadcast %cst_140 : f32 to vector<16x1xf32>
    %265 = arith.addf %261, %264 : vector<16x1xf32>
    %266 = math.rsqrt %265 : vector<16x1xf32>
    %267 = vector.broadcast %266 : vector<16x1xf32> to vector<16x32xf32>
    %268 = arith.mulf %263, %267 : vector<16x32xf32>
    %269 = vector.broadcast %248 : vector<1x32xf32> to vector<16x32xf32>
    %270 = arith.mulf %268, %269 : vector<16x32xf32>
    %271 = vector.broadcast %250 : vector<1x32xf32> to vector<16x32xf32>
    %272 = arith.addf %270, %271 : vector<16x32xf32>
    %c0_141 = arith.constant 0 : index
    %c0_142 = arith.constant 0 : index
    %273 = vector.load %arg22[%c0_141, %c0_142] : memref<16x32xf32, #tpu.memory_space<vmem>>, vector<16x32xf32>
    tpu.vector_store %arg22[%c0_141, %c0_142], %272 {strides = array<i32>} : memref<16x32xf32, #tpu.memory_space<vmem>>, vector<16x32xf32>,
    %c1_i32 = arith.constant 1 : i32
    %274 = arith.cmpi eq, %arg0, %c1_i32 : i32
    %275 = arith.extui %274 : i1 to i32
    %c0_i32_143 = arith.constant 0 : i32
    %276 = arith.cmpi ne, %275, %c0_i32_143 : i32
    scf.if %276 {
      %c0_144 = arith.constant 0 : index
      %c0_145 = arith.constant 0 : index
      %277 = vector.load %arg22[%c0_144, %c0_145] : memref<16x32xf32, #tpu.memory_space<vmem>>, vector<1x32xf32>
      %c8_146 = arith.constant 8 : index
      %c0_147 = arith.constant 0 : index
      %278 = vector.load %arg22[%c8_146, %c0_147] : memref<16x32xf32, #tpu.memory_space<vmem>>, vector<1x32xf32>
      %279 = tpu.concatenate %277, %278 in 0 : vector<1x32xf32>, vector<1x32xf32> -> vector<2x32xf32>
      %c0_148 = arith.constant 0 : index
      %c0_149 = arith.constant 0 : index
      %280 = vector.load %arg17[%c0_148, %c0_149] : memref<32x32xf32, #tpu.memory_space<vmem>>, vector<32x32xf32>
      %cst_150 = arith.constant dense<0.000000e+00> : vector<2x32xf32>
      %281 = tpu.matmul %279, %280, %cst_150 {dimension_numbers = #tpu.dot_dimension_numbers<[1], [0], [0], [1], [0, 0, 1, 1], [], []>} : vector<2x32xf32>, vector<32x32xf32>, vector<2x32xf32> -> vector<2x32xf32>
      %c0_151 = arith.constant 0 : index
      %c0_152 = arith.constant 0 : index
      %282 = vector.load %arg18[%c0_151, %c0_152] : memref<1x32xf32, #tpu.memory_space<vmem>>, vector<1x32xf32>
      %283 = vector.broadcast %282 : vector<1x32xf32> to vector<2x32xf32>
      %284 = arith.addf %281, %283 : vector<2x32xf32>
      %285 = math.tanh %284 : vector<2x32xf32>
      %c0_153 = arith.constant 0 : index
      %c0_154 = arith.constant 0 : index
      %286 = vector.load %arg19[%c0_153, %c0_154] : memref<32x1xf32, #tpu.memory_space<vmem>>, vector<32x1xf32>
      %cst_155 = arith.constant dense<0.000000e+00> : vector<2x1xf32>
      %287 = tpu.matmul %285, %286, %cst_155 {dimension_numbers = #tpu.dot_dimension_numbers<[1], [0], [0], [1], [0, 0, 1, 1], [], []>} : vector<2x32xf32>, vector<32x1xf32>, vector<2x1xf32> -> vector<2x1xf32>
      %c0_156 = arith.constant 0 : index
      %c0_157 = arith.constant 0 : index
      %288 = vector.load %arg20[%c0_156, %c0_157] : memref<1x1xf32, #tpu.memory_space<vmem>>, vector<1x1xf32>
      %289 = vector.broadcast %288 : vector<1x1xf32> to vector<2x1xf32>
      %290 = arith.addf %287, %289 : vector<2x1xf32>
      %c0_158 = arith.constant 0 : index
      %c0_159 = arith.constant 0 : index
      %291 = vector.load %arg21[%c0_158, %c0_159] : memref<2x1xf32, #tpu.memory_space<vmem>>, vector<2x1xf32>
      tpu.vector_store %arg21[%c0_158, %c0_159], %290 {strides = array<i32>} : memref<2x1xf32, #tpu.memory_space<vmem>>, vector<2x1xf32>,
    } else {
    }
    return
  }
  func.func @transform_0(%arg0: i32) -> (i32, i32) {
    %c0_i32 = arith.constant 0 : i32
    %c0_i32_0 = arith.constant 0 : i32
    %c0_i32_1 = arith.constant 0 : i32
    return %c0_i32, %c0_i32_0 : i32, i32
  }
  func.func @transform_1(%arg0: i32) -> (i32, i32) {
    %c0_i32 = arith.constant 0 : i32
    %c0_i32_0 = arith.constant 0 : i32
    %c0_i32_1 = arith.constant 0 : i32
    return %c0_i32, %c0_i32_0 : i32, i32
  }
  func.func @transform_2(%arg0: i32) -> (i32, i32) {
    %c0_i32 = arith.constant 0 : i32
    %c0_i32_0 = arith.constant 0 : i32
    %c0_i32_1 = arith.constant 0 : i32
    return %c0_i32, %c0_i32_0 : i32, i32
  }
  func.func @transform_3(%arg0: i32) -> (i32, i32) {
    %c0_i32 = arith.constant 0 : i32
    %c0_i32_0 = arith.constant 0 : i32
    %c0_i32_1 = arith.constant 0 : i32
    return %c0_i32, %c0_i32_0 : i32, i32
  }
  func.func @transform_4(%arg0: i32) -> (i32, i32, i32) {
    %c0_i32 = arith.constant 0 : i32
    %c0_i32_0 = arith.constant 0 : i32
    %c0_i32_1 = arith.constant 0 : i32
    return %arg0, %c0_i32, %c0_i32_0 : i32, i32, i32
  }
  func.func @transform_5(%arg0: i32) -> (i32, i32, i32) {
    %c0_i32 = arith.constant 0 : i32
    %c0_i32_0 = arith.constant 0 : i32
    %c0_i32_1 = arith.constant 0 : i32
    return %arg0, %c0_i32, %c0_i32_0 : i32, i32, i32
  }
  func.func @transform_6(%arg0: i32) -> (i32, i32, i32) {
    %c0_i32 = arith.constant 0 : i32
    %c0_i32_0 = arith.constant 0 : i32
    %c0_i32_1 = arith.constant 0 : i32
    return %arg0, %c0_i32, %c0_i32_0 : i32, i32, i32
  }
  func.func @transform_7(%arg0: i32) -> (i32, i32, i32) {
    %c0_i32 = arith.constant 0 : i32
    %c0_i32_0 = arith.constant 0 : i32
    %c0_i32_1 = arith.constant 0 : i32
    return %arg0, %c0_i32, %c0_i32_0 : i32, i32, i32
  }
  func.func @transform_8(%arg0: i32) -> (i32, i32, i32) {
    %c0_i32 = arith.constant 0 : i32
    %c0_i32_0 = arith.constant 0 : i32
    %c0_i32_1 = arith.constant 0 : i32
    return %arg0, %c0_i32, %c0_i32_0 : i32, i32, i32
  }
  func.func @transform_9(%arg0: i32) -> (i32, i32, i32) {
    %c0_i32 = arith.constant 0 : i32
    %c0_i32_0 = arith.constant 0 : i32
    %c0_i32_1 = arith.constant 0 : i32
    return %arg0, %c0_i32, %c0_i32_0 : i32, i32, i32
  }
  func.func @transform_10(%arg0: i32) -> (i32, i32, i32) {
    %c0_i32 = arith.constant 0 : i32
    %c0_i32_0 = arith.constant 0 : i32
    %c0_i32_1 = arith.constant 0 : i32
    return %arg0, %c0_i32, %c0_i32_0 : i32, i32, i32
  }
  func.func @transform_11(%arg0: i32) -> (i32, i32, i32) {
    %c0_i32 = arith.constant 0 : i32
    %c0_i32_0 = arith.constant 0 : i32
    %c0_i32_1 = arith.constant 0 : i32
    return %arg0, %c0_i32, %c0_i32_0 : i32, i32, i32
  }
  func.func @transform_12(%arg0: i32) -> (i32, i32, i32) {
    %c0_i32 = arith.constant 0 : i32
    %c0_i32_0 = arith.constant 0 : i32
    %c0_i32_1 = arith.constant 0 : i32
    return %arg0, %c0_i32, %c0_i32_0 : i32, i32, i32
  }
  func.func @transform_13(%arg0: i32) -> (i32, i32, i32) {
    %c0_i32 = arith.constant 0 : i32
    %c0_i32_0 = arith.constant 0 : i32
    %c0_i32_1 = arith.constant 0 : i32
    return %arg0, %c0_i32, %c0_i32_0 : i32, i32, i32
  }
  func.func @transform_14(%arg0: i32) -> (i32, i32, i32) {
    %c0_i32 = arith.constant 0 : i32
    %c0_i32_0 = arith.constant 0 : i32
    %c0_i32_1 = arith.constant 0 : i32
    return %arg0, %c0_i32, %c0_i32_0 : i32, i32, i32
  }
  func.func @transform_15(%arg0: i32) -> (i32, i32, i32) {
    %c0_i32 = arith.constant 0 : i32
    %c0_i32_0 = arith.constant 0 : i32
    %c0_i32_1 = arith.constant 0 : i32
    return %arg0, %c0_i32, %c0_i32_0 : i32, i32, i32
  }
  func.func @transform_16(%arg0: i32) -> (i32, i32) {
    %c0_i32 = arith.constant 0 : i32
    %c0_i32_0 = arith.constant 0 : i32
    %c0_i32_1 = arith.constant 0 : i32
    return %c0_i32, %c0_i32_0 : i32, i32
  }
  func.func @transform_17(%arg0: i32) -> (i32, i32) {
    %c0_i32 = arith.constant 0 : i32
    %c0_i32_0 = arith.constant 0 : i32
    %c0_i32_1 = arith.constant 0 : i32
    return %c0_i32, %c0_i32_0 : i32, i32
  }
  func.func @transform_18(%arg0: i32) -> (i32, i32) {
    %c0_i32 = arith.constant 0 : i32
    %c0_i32_0 = arith.constant 0 : i32
    %c0_i32_1 = arith.constant 0 : i32
    return %c0_i32, %c0_i32_0 : i32, i32
  }
  func.func @transform_19(%arg0: i32) -> (i32, i32) {
    %c0_i32 = arith.constant 0 : i32
    %c0_i32_0 = arith.constant 0 : i32
    %c0_i32_1 = arith.constant 0 : i32
    return %c0_i32, %c0_i32_0 : i32, i32
  }
  func.func @transform_20(%arg0: i32) -> (i32, i32) {
    %c0_i32 = arith.constant 0 : i32
    %c0_i32_0 = arith.constant 0 : i32
    %c0_i32_1 = arith.constant 0 : i32
    return %c0_i32, %c0_i32_0 : i32, i32
  }
}

</mosaic_0001>

<bundles_post_ra>
// kernel: bert_classifier_forward.1
= control target key start
LH: loop header
LB: loop body
LE: loop exit
PB: predicated region body
PF: predicated region fallthrough
CT: control target
= control target key end

     0   :  { %s3590_s23 = smov 0   ;;  %s3948_s0 = inlined_call_operand.vmem [shape: f32[16,32], index: 0, kind: input, shape index: {}]   ;;  %s3949_s1 = inlined_call_operand.vmem [shape: f32[2,8], index: 1, kind: input, shape index: {}]   ;;  %s3950_s2 = inlined_call_operand.vmem [shape: f32[1,32], index: 2, kind: input, shape index: {}]   ;;  %s3951_s3 = inlined_call_operand.vmem [shape: f32[1,32], index: 3, kind: input, shape index: {}]   ;;  %s3952_s4 = inlined_call_operand.vmem [shape: f32[2,32,96], index: 4, kind: input, shape index: {}]   ;;  %s3953_s5 = inlined_call_operand.vmem [shape: f32[2,1,96], index: 5, kind: input, shape index: {}]   ;;  %s3954_s6 = inlined_call_operand.vmem [shape: f32[2,32,32], index: 6, kind: input, shape index: {}]   ;;  %s3955_s7 = inlined_call_operand.vmem [shape: f32[2,1,32], index: 7, kind: input, shape index: {}]   ;;  %s3956_s8 = inlined_call_operand.vmem [shape: f32[2,1,32], index: 8, kind: input, shape index: {}]   ;;  %s3957_s9 = inlined_call_operand.vmem [shape: f32[2,1,32], index: 9, kind: input, shape index: {}]   ;;  %s3958_s10 = inlined_call_operand.vmem [shape: f32[2,32,64], index: 10, kind: input, shape index: {}]   ;;  %s3959_s11 = inlined_call_operand.vmem [shape: f32[2,1,64], index: 11, kind: input, shape index: {}]   ;;  %s3960_s12 = inlined_call_operand.vmem [shape: f32[2,64,32], index: 12, kind: input, shape index: {}]   ;;  %s3961_s13 = inlined_call_operand.vmem [shape: f32[2,1,32], index: 13, kind: input, shape index: {}]   ;;  %s3962_s14 = inlined_call_operand.vmem [shape: f32[2,1,32], index: 14, kind: input, shape index: {}]   ;;  %s3963_s15 = inlined_call_operand.vmem [shape: f32[2,1,32], index: 15, kind: input, shape index: {}]   ;;  %s3964_s16 = inlined_call_operand.vmem [shape: f32[32,32], index: 16, kind: input, shape index: {}]   ;;  %s3965_s17 = inlined_call_operand.vmem [shape: f32[1,32], index: 17, kind: input, shape index: {}]   ;;  %s3966_s18 = inlined_call_operand.vmem [shape: f32[32,1], index: 18, kind: input, shape index: {}]   ;;  %s3967_s19 = inlined_call_operand.<no memory space> [shape: f32[1,1], index: 19, kind: input, shape index: {}]   ;;  %s3968_s20 = inlined_call_operand.vmem [shape: f32[2,1], index: 20, kind: output, shape index: {}]  }
   0x1   :  { %3974 = sst [smem:[#allocation6_spill]] %s3948_s0  ;;  %v25_v0 = vstv %s3967_s19 }
   0x2   :  { %3975 = sst [smem:[#allocation7_spill]] %s3949_s1  ;;  %26 = vst [vmem:[#allocation4] sm:$0x1] %v25_v0 }
   0x3   :  { %3976 = sst [smem:[#allocation8_spill]] %s3950_s2 }
   0x4   :  { %3977 = sst [smem:[#allocation9_spill]] %s3951_s3 }
   0x5   :  { %3978 = sst [smem:[#allocation10_spill]] %s3952_s4 }
   0x6   :  { %3979 = sst [smem:[#allocation11_spill]] %s3954_s6 }
   0x7   :  { %3980 = sst [smem:[#allocation12_spill]] %s3964_s16 }
   0x8   :  { %3981 = sst [smem:[#allocation13_spill]] %s3965_s17 }
   0x9   :  { %3982 = sst [smem:[#allocation14_spill]] %s3966_s18 }
   0xa   :  { %3983 = sst [smem:[#allocation15_spill]] %s3968_s20 }
   0xb LB: > { %3984 = sst [smem:[#allocation5_spill]] %s3461_s23  ;;  %s3596_s24 = sadd.s32 4294967295, %s3461_s23   ;;  %s3461_s23 = sphi %s3590_s23, %s32_s23  }
   0xc   : > { %p3039_p0 = scmp.ge.s32.totalorder %s3461_s23, 1  ;;  %p653_p1 = scmp.lt.s32.totalorder %s3461_s23, 3 }
   0xe   : > { %p654_p2 = pnand %p3039_p0, %p653_p1 }
   0xf   : > { %p745_p3 = scmp.lt.s32.totalorder (!%p654_p2), %s3596_s24, 1  ;;  %s3985_s4 = sld [smem:[#allocation10_spill]] (!%p654_p2) }
  0x10   : > { %657 = sbr.rel (%p654_p2) target bundleno = 3387 (0xd3b), region = 100  ;;  %s3986_s6 = sld [smem:[#allocation11_spill]] (!%p654_p2) }
  0x11   : > { %p3048_p4 = scmp.ne.s32.totalorder (!%p654_p2), %s3596_s24, 0 }
  0x17   : > { %s3602_s19 = scalar_select %p745_p3, %s3596_s24, 1 }
  0x18   : > { %792 = sbr.rel (%p3048_p4) target bundleno = 349 (0x15d), region = 104  ;;  %s3987_s1 = sld [smem:[#allocation6_spill]] (!%p3048_p4)  ;;  %vm797_vm0 = vcmask (!%p3048_p4), 261120  }
  0x19   : > { %s3098_s2 = sshll.u32 %s3602_s19, 5  ;;  %s3101_s16 = sshll.u32 %s3602_s19, 6 }
  0x1a   : > { %s3612_s29 = scalar_lea.vmem %s3985_s4, %s3098_s2  ;;  %s3617_s21 = scalar_lea.vmem %s3986_s6, %s3098_s2 }
  0x1b   : > { %s3634_s4 = scalar_lea.vmem %s3958_s10, %s3098_s2  ;;  %s774_s6 = scalar_lea.vmem %s3959_s11, %s3602_s19 }
  0x1c   : > { %s3644_s23 = scalar_lea.vmem %s3960_s12, %s3101_s16  ;;  %s782_s25 = scalar_lea.vmem %s3961_s13, %s3602_s19 }
  0x1d   : > { %s785_s27 = scalar_lea.vmem %s3962_s14, %s3602_s19  ;;  %s788_s18 = scalar_lea.vmem %s3963_s15, %s3602_s19 }
  0x1e   : > { %v793_v1 = vld [vmem:[%s3987_s1] sm:$0xff] (!%p3048_p4)  ;;  %v794_v2 = vld [vmem:[%s3987_s1 + $0x8] sm:$0xff] (!%p3048_p4)  ;;  %s3988_s20 = sld [smem:[#allocation8_spill]] (!%p3048_p4)  ;;  %s3989_s28 = sld [smem:[#allocation9_spill]] (!%p3048_p4) }
  0x1f   : > { %v798_v3 = vsel %vm797_vm0, %v793_v1, 0.0  ;;  %v801_v4 = vsel %vm797_vm0, %v794_v2, 0.0 }
  0x20   : > { %799 = vadd.xlane.f32.xlu0 %v798_v3 }
  0x24   : > { %802 = vadd.xlane.f32.xlu0 %v801_v4  ;;  %v3049_v22 = vld [vmem:[%s3988_s20] ss:$0 sm:$0xff] }
  0x25   : > { %v3050_v24 = vld [vmem:[%s3989_s28] ss:$0 sm:$0xff] }
  0xad   : > { %v800_v5 = vpop.xlane.xlu0 %799 }
  0xae   : > { %v805_v6 = vmul.f32 0.03125, %v800_v5 }
  0xb0   : > { %v807_v7 = vsub.f32 %v793_v1, %v805_v6 }
  0xb1   : > { %v803_v8 = vpop.xlane.xlu0 %802 }
  0xb2   : > { %v806_v9 = vmul.f32 0.03125, %v803_v8  ;;  %v809_v10 = vmul.f32 %v807_v7, %v807_v7 }
  0xb4   : > { %v808_v11 = vsub.f32 %v794_v2, %v806_v9  ;;  %v811_v12 = vsel %vm797_vm0, %v809_v10, 0.0 }
  0xb5   : > { %812 = vadd.xlane.f32.xlu1 %v811_v12 }
  0xb6   : > { %v810_v13 = vmul.f32 %v808_v11, %v808_v11 }
  0xb8   : > { %v814_v14 = vsel %vm797_vm0, %v810_v13, 0.0 }
  0xb9   : > { %815 = vadd.xlane.f32.xlu1 %v814_v14 }
 0x142   : > { %v813_v15 = vpop.xlane.xlu1 %812 }
 0x143   : > { %v817_v16 = vmul.f32 0.03125, %v813_v15 }
 0x145   : > { %v819_v17 = vadd.f32 1e-12, %v817_v16 }
 0x146   : > { %v816_v18 = vpop.xlane.xlu1 %815 }
 0x147   : > { %3405 = vrsqrt.f32 %v819_v17  ;;  %v818_v19 = vmul.f32 0.03125, %v816_v18 }
 0x149   : > { %v820_v20 = vadd.f32 1e-12, %v818_v19 }
 0x14b   : > { %3407 = vrsqrt.f32 %v820_v20 }
 0x151   : > { %v3406_v21 = vpop.eup %3405 }
 0x152   : > { %v823_v23 = vmul.f32 %v3406_v21, %v807_v7 }
 0x154   : > { %v831_v25 = vmul.f32 %v3049_v22, %v823_v23 }
 0x155   : > { %v3408_v26 = vpop.eup %3407 }
 0x156   : > { %v839_v27 = vadd.f32 %v3050_v24, %v831_v25  ;;  %v824_v28 = vmul.f32 %v3408_v26, %v808_v11 }
 0x158   : > { %841 = vst.msk [vmem:[#allocation2] sm:$0xff] %vm797_vm0, %v839_v27  ;;  %v832_v29 = vmul.f32 %v3049_v22, %v824_v28 }
 0x15a   : > { %v840_v30 = vadd.f32 %v3050_v24, %v832_v29 }
 0x15c   : > { %842 = vst.msk [vmem:[#allocation2 + $0x8] sm:$0xff] %vm797_vm0, %v840_v30 }
 0x15d PF: > { %v845_v31 = vld [vmem:[%s3612_s29] sm:$0xff]  ;;  %v846_v32 = vld [vmem:[%s3612_s29 + $0x8] sm:$0xff]  ;;  %v847_v33 = vld [vmem:[%s3612_s29 + $0x10] sm:$0xff]  ;;  %vm856_vm1 = vcmask 261120   ;;  %v3463_v39 = vmov 0.0   ;;  %s3990_s0 = scalar_lea.vmem %s3953_s5, %s3602_s19  ;;  %vm938_vm2 = vcmask 785408   ;;  %v1024_v62 = vlaneseq  ;;  %s3992_s30 = scalar_lea.vmem %s3955_s7, %s3602_s19 }
 0x15e   : > { %v3326_v34 = vpack.c.bf16 %v846_v32, %v845_v31  ;;  %v848_v35 = vld [vmem:[%s3612_s29 + $0x18] sm:$0xff]  ;;  %3193 = vmatprep.subr.mxu0 %v3463_v39  ;;  %v3051_v40 = vld [vmem:[%s3990_s0] ss:$0 sm:$0xff]  ;;  %vm3464_vm3 = vmmov 0   ;;  %s3465_s16 = smov 120   ;;  %s3466_s22 = smov 96  }
 0x15f   : > { %v3681_v36 = vld [vmem:[#allocation2] sm:$0xff]  ;;  %v3330_v37 = vpack.c.bf16 %v848_v35, %v847_v33  ;;  %3195 = vmatprep.mubr.msk.f32.mxu0 %vm3464_vm3, %v3463_v39  ;;  %s3467_s26 = smov 80   ;;  %s3468_s17 = smov 88   ;;  %vm948_vm4 = vcmask 64512   ;;  %v1025_v1 = vshrl.u32 %v1024_v62, 7  ;;  %vm1630_vm5 = vcmask 130048  }
 0x160   : > { %3180 = vmatprep.mubr.msk.f32.mxu1 %vm856_vm1, %v3681_v36  ;;  %3327 = vmatprep.subr.bf16.mxu1 %v3326_v34  ;;  %s3469_s20 = smov 72   ;;  %s3470_s3 = smov 112   ;;  %vm1632_vm6 = vcmask 195584   ;;  %vm2588_vm7 = vcmask 523264  }
 0x161   : > { %3329 = vmatpush3.bf16.msra.mxu1 %v3326_v34  ;;  %s3471_s2 = smov 104   ;;  %s3472_s28 = smov 56   ;;  %v1026_v3 = vsub.s32 0, %v1025_v1 }
 0x162   : > { %3331 = vmatprep.subr.bf16.mxu1 %v3330_v37  ;;  %s3473_s29 = smov 64   ;;  %p3091_p5 = scmp.ne.s32.totalorder %s3596_s24, 1 }
 0x163   : > { %v3685_v38 = vld [vmem:[#allocation2 + $0x8] sm:$0xff]  ;;  %s3995_s0 = sld [smem:[#allocation12_spill]] (!%p3091_p5)  ;;  %vm3480_vm8 = vmmov (!%p3091_p5), 0   ;;  %vm2727_vm9 = vcmask (!%p3091_p5), 1040384   ;;  %vm2898_vm10 = vcmask (!%p3091_p5), 1024  }
 0x165   : > { %3333 = vmatpush3.bf16.msra.mxu1 %v3330_v37 }
 0x166   : > { %3183 = vmatprep.subr.mxu1 %v3463_v39 }
 0x168   : > { %3181 = vmatmul.mubr.msk.f32.vlgmr.msra.gmra.mrb[0].mxu1 %vm856_vm1, %v3685_v38 }
 0x169   : > { %3185 = vmatprep.mubr.msk.f32.mxu1 %vm3464_vm3, %v3463_v39 }
 0x23b   : > { %v3182_v41 = vpop.f32.mrb[0].mxu1 }
 0x23c   : > { %v935_v42 = vadd.f32 %v3182_v41, %v3051_v40  ;;  %v929_v43 = vpop.f32.mrb[1].mxu1 }
 0x23d   : > { %v930_v44 = vadd.f32 %v3051_v40, %v929_v43 }
 0x23e   : > { %940 = vst.msk [vmem:[#allocation3 + $0x8] sm:$0xff] %vm938_vm2, %v935_v42 }
 0x23f   : > { %939 = vst.msk [vmem:[#allocation3] sm:$0xff] %vm938_vm2, %v930_v44 }
 0x245   : > { %v3708_v46 = vld [vmem:[#allocation3 + $0x8] sm:$0xff] }
 0x246   : > { %v3700_v45 = vld [vmem:[#allocation3] sm:$0xff] }
 0x247   : > { %1116 = vrot.lane.b32.xlu1 %v3700_v45, %s3465_s16  ;;  %946 = vrot.lane.b32.xlu0 %v3700_v45, %s3466_s22 }
 0x24b   : > { %1285 = vrot.lane.b32.xlu1 %v3700_v45, %s3467_s26  ;;  %1118 = vrot.lane.b32.xlu0 %v3700_v45, %s3468_s17 }
 0x24f   : > { %1452 = vrot.lane.b32.xlu1 %v3700_v45, %s3469_s20  ;;  %1283 = vrot.lane.b32.xlu0 %v3700_v45, %s3470_s3 }
 0x253   : > { %1639 = vrot.lane.b32.xlu1 %v3708_v46, %s3466_s22  ;;  %1450 = vrot.lane.b32.xlu0 %v3700_v45, %s3471_s2 }
 0x257   : > { %1808 = vrot.lane.b32.xlu1 %v3708_v46, %s3465_s16  ;;  %1810 = vrot.lane.b32.xlu0 %v3708_v46, %s3468_s17  ;;  %s3991_s16 = sld [smem:[#allocation7_spill]]  ;;  %s3474_s17 = smov 40  }
 0x25b   : > { %1975 = vrot.lane.b32.xlu1 %v3708_v46, %s3470_s3  ;;  %1977 = vrot.lane.b32.xlu0 %v3708_v46, %s3467_s26  ;;  %s3476_s3 = smov 8   ;;  %s3993_s26 = scalar_lea.vmem %s3956_s8, %s3602_s19 }
 0x25d   : > { %v941_v63 = vld [vmem:[%s3991_s16] sm:$0x1]  ;;  %v1634_v10 = vld [vmem:[%s3991_s16 + $0x1] sm:$0x1] }
 0x25e   : > { %v942_v0 = vsub.f32 1.0, %v941_v63  ;;  %v1635_v15 = vsub.f32 1.0, %v1634_v10 }
 0x25f   : > { %2142 = vrot.lane.b32.xlu1 %v3708_v46, %s3471_s2  ;;  %2144 = vrot.lane.b32.xlu0 %v3708_v46, %s3469_s20  ;;  %s3475_s20 = smov 48   ;;  %s3477_s2 = smov 16  }
 0x260   : > { %v943_v2 = vmul.f32 -1e+09, %v942_v0  ;;  %v1636_v21 = vmul.f32 -1e+09, %v1635_v15 }
 0x262   : > { %v1027_v4 = vrot.slane %v943_v2, %v1026_v3  ;;  %v1719_v27 = vrot.slane %v1636_v21, %v1026_v3 }
 0x263   : > { %1207 = vrot.lane.b32.xlu1 %v3700_v45, %s3472_s28  ;;  %1040 = vrot.lane.b32.xlu0 %v3700_v45, %s3473_s29 }
 0x2b9   : > { %v1117_v47 = vpop.permute.xlu1 %1116  ;;  %v947_v48 = vpop.permute.xlu0 %946 }
 0x2ba   : > { %3184 = vmatpush3.xpose.msk.msra.mxu1 %vm948_vm4, %v947_v48 }
 0x2bb   : > { %3188 = vmatprep.subr.mxu1 %v3463_v39 }
 0x2bd   : > { %v1286_v49 = vpop.permute.xlu1 %1285  ;;  %3186 = vmatmul.mubr.msk.f32.vlgmr.msra.gmra.mrb[2].mxu1 %vm948_vm4, %v3700_v45  ;;  %v1119_v50 = vpop.permute.xlu0 %1118 }
 0x2be   : > { %3194 = vmatpush3.xpose.msk.msra.mxu0 %vm948_vm4, %v1119_v50  ;;  %3190 = vmatprep.mubr.msk.f32.mxu1 %vm3464_vm3, %v3463_v39 }
 0x2bf   : > { %3203 = vmatprep.subr.mxu0 %v3463_v39 }
 0x2c1   : > { %v1453_v51 = vpop.permute.xlu1 %1452  ;;  %3196 = vmatmul.mubr.msk.f32.vlgmr.msra.gmra.mrb[0].mxu0 %vm948_vm4, %v1117_v47  ;;  %v1284_v52 = vpop.permute.xlu0 %1283 }
 0x2c2   : > { %3204 = vmatpush3.xpose.msk.msra.mxu0 %vm948_vm4, %v1286_v49  ;;  %3205 = vmatprep.mubr.msk.f32.mxu0 %vm3464_vm3, %v3463_v39 }
 0x2c3   : > { %3213 = vmatprep.subr.mxu0 %v3463_v39 }
 0x2c5   : > { %3206 = vmatmul.mubr.msk.f32.vlgmr.msra.gmra.mrb[2].mxu0 %vm948_vm4, %v1284_v52  ;;  %v1451_v53 = vpop.permute.xlu0 %1450  ;;  %v1640_v54 = vpop.permute.xlu1 %1639 }
 0x2c6   : > { %3214 = vmatpush3.xpose.msk.msra.mxu0 %vm948_vm4, %v1453_v51  ;;  %3215 = vmatprep.mubr.msk.f32.mxu0 %vm3464_vm3, %v3463_v39 }
 0x2c7   : > { %3223 = vmatprep.subr.mxu0 %v3463_v39 }
 0x2c9   : > { %3216 = vmatmul.mubr.msk.f32.vlgmr.msra.gmra.mrb[4].mxu0 %vm948_vm4, %v1451_v53  ;;  %v1811_v55 = vpop.permute.xlu0 %1810  ;;  %v1809_v56 = vpop.permute.xlu1 %1808 }
 0x2ca   : > { %3224 = vmatpush3.xpose.msk.msra.mxu0 %vm948_vm4, %v1640_v54  ;;  %3225 = vmatprep.mubr.msk.f32.mxu0 %vm3464_vm3, %v3463_v39 }
 0x2cb   : > { %3233 = vmatprep.subr.mxu0 %v3463_v39 }
 0x2cd   : > { %3226 = vmatmul.mubr.msk.f32.vlgmr.msra.gmra.mrb[6].mxu0 %vm948_vm4, %v3708_v46  ;;  %v1978_v57 = vpop.permute.xlu0 %1977  ;;  %v1976_v59 = vpop.permute.xlu1 %1975 }
 0x2ce   : > { %3234 = vmatpush3.xpose.msk.msra.mxu0 %vm948_vm4, %v1811_v55  ;;  %3235 = vmatprep.mubr.msk.f32.mxu0 %vm3464_vm3, %v3463_v39 }
 0x2cf   : > { %3243 = vmatprep.subr.mxu0 %v3463_v39 }
 0x2d1   : > { %3236 = vmatmul.mubr.msk.f32.vlgmr.msra.gmra.mrb[8].mxu0 %vm948_vm4, %v1809_v56  ;;  %v2145_v58 = vpop.permute.xlu0 %2144  ;;  %v2143_v61 = vpop.permute.xlu1 %2142 }
 0x2d2   : > { %3244 = vmatpush3.xpose.msk.msra.mxu0 %vm948_vm4, %v1978_v57  ;;  %3245 = vmatprep.mubr.msk.f32.mxu0 %vm3464_vm3, %v3463_v39 }
 0x2d3   : > { %3253 = vmatprep.subr.mxu0 %v3463_v39 }
 0x2d5   : > { %3246 = vmatmul.mubr.msk.f32.vlgmr.msra.gmra.mrb[10].mxu0 %vm948_vm4, %v1976_v59  ;;  %v1041_v60 = vpop.permute.xlu0 %1040  ;;  %v3780_v54 = vpop.permute.xlu1 %1207 }
 0x2d6   : > { %3189 = vmatpush3.msra.mxu1 %v1041_v60  ;;  %3254 = vmatpush3.xpose.msk.msra.mxu0 %vm948_vm4, %v2145_v58 }
 0x2d7   : > { %3255 = vmatprep.mubr.msk.f32.mxu0 %vm3464_vm3, %v3463_v39  ;;  %3198 = vmatprep.subr.mxu1 %v3463_v39 }
 0x2d9   : > { %3256 = vmatmul.mubr.msk.f32.vlgmr.msra.gmra.mrb[12].mxu0 %vm948_vm4, %v2143_v61 }
 0x390   : > { %v1019_v5 = vpop.f32.mrb[2].mxu1 }
 0x391   : > { %v1023_v6 = vmul.f32 0.35355338, %v1019_v5  ;;  %v3187_v7 = vpop.f32.mrb[3].mxu1 }
 0x393   : > { %v1028_v8 = vadd.f32 %v1027_v4, %v1023_v6 }
 0x394   : > { %v1190_v9 = vpop.f32.mrb[0].mxu0 }
 0x395   : > { %v1194_v11 = vmul.f32 0.35355338, %v1190_v9  ;;  %v3197_v12 = vpop.f32.mrb[1].mxu0  ;;  %v1029_v13 = vsel %vm948_vm4, %v1028_v8, -inf }
 0x396   : > { %1030 = vmax.xlane.f32.xlu0 %v1029_v13 }
 0x397   : > { %v1195_v14 = vadd.f32 %v1194_v11, %v1027_v4 }
 0x398   : > { %v1357_v16 = vpop.f32.mrb[2].mxu0 }
 0x399   : > { %v1361_v17 = vmul.f32 0.35355338, %v1357_v16  ;;  %v3207_v18 = vpop.f32.mrb[3].mxu0  ;;  %v1196_v19 = vsel %vm948_vm4, %v1195_v14, -inf }
 0x39a   : > { %1197 = vmax.xlane.f32.xlu1 %v1196_v19 }
 0x39b   : > { %v1362_v20 = vadd.f32 %v1361_v17, %v1027_v4 }
 0x39c   : > { %v1524_v22 = vpop.f32.mrb[4].mxu0 }
 0x39d   : > { %v1528_v23 = vmul.f32 0.35355338, %v1524_v22  ;;  %v3217_v24 = vpop.f32.mrb[5].mxu0  ;;  %v1363_v25 = vsel %vm948_vm4, %v1362_v20, -inf }
 0x39e   : > { %1364 = vmax.xlane.f32.xlu0 %v1363_v25 }
 0x39f   : > { %v1529_v26 = vadd.f32 %v1528_v23, %v1027_v4 }
 0x3a0   : > { %v1711_v28 = vpop.f32.mrb[6].mxu0 }
 0x3a1   : > { %v1715_v29 = vmul.f32 0.35355338, %v1711_v28  ;;  %v3227_v30 = vpop.f32.mrb[7].mxu0  ;;  %v1530_v31 = vsel %vm948_vm4, %v1529_v26, -inf }
 0x3a2   : > { %1531 = vmax.xlane.f32.xlu0 %v1530_v31 }
 0x3a3   : > { %v1720_v32 = vadd.f32 %v1719_v27, %v1715_v29 }
 0x3a4   : > { %v1882_v33 = vpop.f32.mrb[8].mxu0 }
 0x3a5   : > { %v1886_v34 = vmul.f32 0.35355338, %v1882_v33  ;;  %v3237_v35 = vpop.f32.mrb[9].mxu0  ;;  %v1721_v37 = vsel %vm948_vm4, %v1720_v32, -inf }
 0x3a6   : > { %1722 = vmax.xlane.f32.xlu1 %v1721_v37 }
 0x3a7   : > { %v1887_v40 = vadd.f32 %v1886_v34, %v1719_v27 }
 0x3a8   : > { %v2049_v41 = vpop.f32.mrb[10].mxu0 }
 0x3a9   : > { %v2053_v42 = vmul.f32 0.35355338, %v2049_v41  ;;  %v3247_v43 = vpop.f32.mrb[11].mxu0  ;;  %v1888_v44 = vsel %vm948_vm4, %v1887_v40, -inf }
 0x3aa   : > { %1889 = vmax.xlane.f32.xlu0 %v1888_v44 }
 0x3ab   : > { %v2054_v47 = vadd.f32 %v2053_v42, %v1719_v27 }
 0x3ac   : > { %v2216_v48 = vpop.f32.mrb[12].mxu0 }
 0x3ad   : > { %v2220_v49 = vmul.f32 0.35355338, %v2216_v48  ;;  %v3257_v50 = vpop.f32.mrb[13].mxu0  ;;  %v2055_v51 = vsel %vm948_vm4, %v2054_v47, -inf }
 0x3ae   : > { %2056 = vmax.xlane.f32.xlu1 %v2055_v51 }
 0x3af   : > { %v2221_v52 = vadd.f32 %v2220_v49, %v1719_v27 }
 0x3b1   : > { %v2222_v53 = vsel %vm948_vm4, %v2221_v52, -inf }
 0x3b2   : > { %2223 = vmax.xlane.f32.xlu0 %v2222_v53 }
 0x3bf   : > { %1541 = vrot.lane.b32.xlu1 %v3700_v45, %s3474_s17 }
 0x3c8   : > { %1374 = vrot.lane.b32.xlu0 %v3700_v45, %s3475_s20 }
 0x423   : > { %v1031_v55 = vpop.xlane.xlu0 %1030 }
 0x424   : > { %v1032_v56 = vsub.f32 %v1028_v8, %v1031_v55 }
 0x426   : > { %v1033_v57 = vmul.f32 1.442695, %v1032_v56 }
 0x427   : > { %v1198_v58 = vpop.xlane.xlu1 %1197 }
 0x428   : > { %3409 = vpow2.f32 %v1033_v57  ;;  %v1199_v59 = vsub.f32 %v1195_v14, %v1198_v58 }
 0x42a   : > { %v1200_v60 = vmul.f32 1.442695, %v1199_v59 }
 0x42b   : > { %v1365_v61 = vpop.xlane.xlu0 %1364 }
 0x42c   : > { %3411 = vpow2.f32 %v1200_v60  ;;  %v1366_v62 = vsub.f32 %v1362_v20, %v1365_v61 }
 0x42e   : > { %v1367_v63 = vmul.f32 1.442695, %v1366_v62 }
 0x42f   : > { %v1532_v0 = vpop.xlane.xlu0 %1531 }
 0x430   : > { %3413 = vpow2.f32 %v1367_v63  ;;  %v1533_v1 = vsub.f32 %v1529_v26, %v1532_v0 }
 0x432   : > { %v3410_v2 = vpop.eup %3409  ;;  %v1534_v3 = vmul.f32 1.442695, %v1533_v1 }
 0x433   : > { %v1035_v45 = vsel %vm948_vm4, %v3410_v2, 0.0  ;;  %v1723_v10 = vpop.xlane.xlu1 %1722 }
 0x434   : > { %3415 = vpow2.f32 %v1534_v3  ;;  %1036 = vadd.xlane.f32.xlu1 %v1035_v45  ;;  %v1724_v11 = vsub.f32 %v1720_v32, %v1723_v10  ;;  %v2327_v10 = vld [vmem:[%s3617_s21 + $0x18] sm:$0xff] }
 0x436   : > { %v3412_v4 = vpop.eup %3411  ;;  %v1725_v15 = vmul.f32 1.442695, %v1724_v11 }
 0x437   : > { %v1202_v5 = vsel %vm948_vm4, %v3412_v4, 0.0  ;;  %v1890_v12 = vpop.xlane.xlu0 %1889 }
 0x438   : > { %1203 = vadd.xlane.f32.xlu0 %v1202_v5  ;;  %v1891_v14 = vsub.f32 %v1887_v40, %v1890_v12  ;;  %3417 = vpow2.f32 %v1725_v15 }
 0x43a   : > { %v3414_v6 = vpop.eup %3413  ;;  %v1892_v18 = vmul.f32 1.442695, %v1891_v14 }
 0x43b   : > { %v1369_v7 = vsel %vm948_vm4, %v3414_v6, 0.0  ;;  %v2057_v13 = vpop.xlane.xlu1 %2056 }
 0x43c   : > { %1370 = vadd.xlane.f32.xlu1 %v1369_v7  ;;  %v2058_v16 = vsub.f32 %v2054_v47, %v2057_v13  ;;  %3419 = vpow2.f32 %v1892_v18  ;;  %v2325_v7 = vld [vmem:[%s3617_s21 + $0x8] sm:$0xff] }
 0x43e   : > { %v3785_v8 = vpop.eup %3415  ;;  %v2059_v19 = vmul.f32 1.442695, %v2058_v16 }
 0x43f   : > { %v1536_v9 = vsel %vm948_vm4, %v3785_v8, 0.0  ;;  %v2224_v17 = vpop.xlane.xlu0 %2223  ;;  %v1542_v30 = vpop.permute.xlu1 %1541 }
 0x440   : > { %1537 = vadd.xlane.f32.xlu0 %v1536_v9  ;;  %v2225_v20 = vsub.f32 %v2221_v52, %v2224_v17  ;;  %3421 = vpow2.f32 %v2059_v19  ;;  %v2326_v9 = vld [vmem:[%s3617_s21 + $0x10] sm:$0xff] }
 0x441   : > { %v3338_v11 = vpack.c.bf16 %v2327_v10, %v2326_v9  ;;  %v2573_v9 = vld [vmem:[%s3644_s23] sm:$0xff]  ;;  %v2574_v10 = vld [vmem:[%s3644_s23 + $0x8] sm:$0xff] }
 0x442   : > { %v2226_v21 = vmul.f32 1.442695, %v2225_v20  ;;  %v3418_v22 = vpop.eup %3417 }
 0x443   : > { %v1727_v24 = vsel %vm948_vm4, %v3418_v22, 0.0  ;;  %v1375_v31 = vpop.permute.xlu0 %1374 }
 0x444   : > { %3423 = vpow2.f32 %v2226_v21 }
 0x446   : > { %v3793_v23 = vpop.eup %3419 }
 0x447   : > { %v1894_v27 = vsel %vm948_vm4, %v3793_v23, 0.0 }
 0x44a   : > { %v3796_v25 = vpop.eup %3421 }
 0x44b   : > { %v2061_v26 = vsel %vm948_vm4, %v3796_v25, 0.0 }
 0x44d   : > { %1899 = vrot.lane.b32.xlu1 %v3708_v46, %s3472_s28  ;;  %s3478_s28 = smov 24  }
 0x44e   : > { %v3802_v28 = vpop.eup %3423 }
 0x44f   : > { %v2228_v29 = vsel %vm948_vm4, %v3802_v28, 0.0 }
 0x456   : > { %1732 = vrot.lane.b32.xlu0 %v3708_v46, %s3473_s29 }
 0x471   : > { %1728 = vadd.xlane.f32.xlu1 %v1727_v24 }
 0x475   : > { %2062 = vadd.xlane.f32.xlu1 %v2061_v26  ;;  %1895 = vadd.xlane.f32.xlu0 %v1894_v27 }
 0x479   : > { %2229 = vadd.xlane.f32.xlu1 %v2228_v29 }
 0x48a   : > { %2233 = vrot.lane.b32.xlu1 %v3708_v46, %s3474_s17 }
 0x48b   : > { %2066 = vrot.lane.b32.xlu0 %v3708_v46, %s3475_s20  ;;  %s3994_s20 = scalar_lea.vmem %s3957_s9, %s3602_s19 }
 0x4c1   : > { %v1037_v32 = vpop.xlane.xlu1 %1036 }
 0x4c2   : > { %3425 = vrcp.f32 %v1037_v32  ;;  %v3078_v32 = vld [vmem:[%s3992_s30] ss:$0 sm:$0xff]  ;;  %s3997_s30 = sld [smem:[#allocation13_spill]] (!%p3091_p5) }
 0x4c5   : > { %v1204_v33 = vpop.xlane.xlu0 %1203 }
 0x4c6   : > { %3427 = vrcp.f32 %v1204_v33 }
 0x4c9   : > { %v1371_v34 = vpop.xlane.xlu1 %1370 }
 0x4ca   : > { %3429 = vrcp.f32 %v1371_v34 }
 0x4cc   : > { %v3426_v35 = vpop.eup %3425 }
 0x4cd   : > { %v1039_v37 = vmul.f32 %v3426_v35, %v3410_v2  ;;  %v1538_v40 = vpop.xlane.xlu0 %1537  ;;  %v1900_v49 = vpop.permute.xlu1 %1899 }
 0x4ce   : > { %3431 = vrcp.f32 %v1538_v40 }
 0x4cf   : > { %3191 = vmatmul.mubr.msk.f32.vlgmr.msra.gmra.mrb[4].mxu1 %vm948_vm4, %v1039_v37 }
 0x4d0   : > { %v3428_v41 = vpop.eup %3427  ;;  %3199 = vmatpush3.msra.mxu1 %v3780_v54  ;;  %3200 = vmatprep.mubr.msk.f32.mxu1 %vm3464_vm3, %v3463_v39 }
 0x4d1   : > { %v1206_v46 = vmul.f32 %v3428_v41, %v3412_v4  ;;  %3208 = vmatprep.subr.mxu1 %v3463_v39  ;;  %v1733_v48 = vpop.permute.xlu0 %1732 }
 0x4d3   : > { %3201 = vmatmul.mubr.msk.f32.vlgmr.msra.gmra.mrb[6].mxu1 %vm948_vm4, %v1206_v46 }
 0x4d4   : > { %v3430_v42 = vpop.eup %3429  ;;  %3209 = vmatpush3.msra.mxu1 %v1375_v31  ;;  %3210 = vmatprep.mubr.msk.f32.mxu1 %vm3464_vm3, %v3463_v39 }
 0x4d5   : > { %v1373_v43 = vmul.f32 %v3430_v42, %v3414_v6  ;;  %3218 = vmatprep.subr.mxu1 %v3463_v39  ;;  %v2324_v6 = vld [vmem:[%s3617_s21] sm:$0xff] }
 0x4d7   : > { %3211 = vmatmul.mubr.msk.f32.vlgmr.msra.gmra.mrb[8].mxu1 %vm948_vm4, %v1373_v43 }
 0x4d8   : > { %v3432_v44 = vpop.eup %3431  ;;  %3219 = vmatpush3.msra.mxu1 %v1542_v30  ;;  %3220 = vmatprep.mubr.msk.f32.mxu1 %vm3464_vm3, %v3463_v39 }
 0x4d9   : > { %v1540_v47 = vmul.f32 %v3432_v44, %v3785_v8  ;;  %3228 = vmatprep.subr.mxu1 %v3463_v39  ;;  %v3334_v8 = vpack.c.bf16 %v2325_v7, %v2324_v6 }
 0x4db   : > { %3221 = vmatmul.mubr.msk.f32.vlgmr.msra.gmra.mrb[10].mxu1 %vm948_vm4, %v1540_v47  ;;  %3335 = vmatprep.subr.bf16.mxu0 %v3334_v8 }
 0x4dc   : > { %3229 = vmatpush3.msra.mxu1 %v1733_v48  ;;  %3230 = vmatprep.mubr.msk.f32.mxu1 %vm3464_vm3, %v3463_v39 }
 0x4dd   : > { %3238 = vmatprep.subr.mxu1 %v3463_v39  ;;  %3337 = vmatpush3.bf16.msra.mxu0 %v3334_v8 }
 0x4de   : > { %3339 = vmatprep.subr.bf16.mxu0 %v3338_v11 }
 0x4e1   : > { %3341 = vmatpush3.bf16.msra.mxu0 %v3338_v11  ;;  %v3350_v11 = vpack.c.bf16 %v2574_v10, %v2573_v9  ;;  %v3090_v9 = vld [vmem:[%s788_s18] ss:$0 sm:$0xff]  ;;  %s3998_s18 = sld [smem:[#allocation15_spill]] (!%p3091_p5) }
 0x4e3   : > { %3351 = vmatprep.subr.bf16.mxu0 %v3350_v11 }
 0x4fe   : > { %v1729_v50 = vpop.xlane.xlu1 %1728 }
 0x4ff   : > { %3433 = vrcp.f32 %v1729_v50 }
 0x502   : > { %v2063_v51 = vpop.xlane.xlu1 %2062  ;;  %v1896_v52 = vpop.xlane.xlu0 %1895 }
 0x503   : > { %3435 = vrcp.f32 %v1896_v52 }
 0x504   : > { %3437 = vrcp.f32 %v2063_v51 }
 0x506   : > { %v2230_v53 = vpop.xlane.xlu1 %2229  ;;  %v2067_v59 = vpop.permute.xlu0 %2066 }
 0x507   : > { %3439 = vrcp.f32 %v2230_v53  ;;  %v2463_v53 = vld [vmem:[%s3634_s4] sm:$0xff] }
 0x509   : > { %v3434_v54 = vpop.eup %3433 }
 0x50a   : > { %v1731_v55 = vmul.f32 %v3434_v54, %v3418_v22  ;;  %v2234_v62 = vpop.permute.xlu1 %2233  ;;  %v2464_v54 = vld [vmem:[%s3634_s4 + $0x8] sm:$0xff] }
 0x50c   : > { %3231 = vmatmul.mubr.msk.f32.vlgmr.msra.gmra.mrb[12].mxu1 %vm948_vm4, %v1731_v55  ;;  %v3342_v55 = vpack.c.bf16 %v2464_v54, %v2463_v53 }
 0x50d   : > { %3239 = vmatpush3.msra.mxu1 %v1900_v49  ;;  %3240 = vmatprep.mubr.msk.f32.mxu1 %vm3464_vm3, %v3463_v39  ;;  %v3436_v56 = vpop.eup %3435 }
 0x50e   : > { %3248 = vmatprep.subr.mxu1 %v3463_v39  ;;  %v1898_v57 = vmul.f32 %v3436_v56, %v3793_v23  ;;  %v3438_v58 = vpop.eup %3437  ;;  %v2465_v56 = vld [vmem:[%s3634_s4 + $0x10] sm:$0xff] }
 0x50f   : > { %v2065_v60 = vmul.f32 %v3438_v58, %v3796_v25 }
 0x510   : > { %3241 = vmatmul.mubr.msk.f32.vlgmr.msra.gmra.mrb[14].mxu1 %vm948_vm4, %v1898_v57  ;;  %v2466_v57 = vld [vmem:[%s3634_s4 + $0x18] sm:$0xff] }
 0x511   : > { %3249 = vmatpush3.msra.mxu1 %v2067_v59  ;;  %3250 = vmatprep.mubr.msk.f32.mxu1 %vm3464_vm3, %v3463_v39  ;;  %v3440_v61 = vpop.eup %3439  ;;  %v3346_v58 = vpack.c.bf16 %v2466_v57, %v2465_v56 }
 0x512   : > { %3258 = vmatprep.subr.mxu1 %v3463_v39  ;;  %v2232_v63 = vmul.f32 %v3440_v61, %v3802_v28 }
 0x514   : > { %3251 = vmatmul.mubr.msk.f32.vlgmr.msra.gmra.mrb[16].mxu1 %vm948_vm4, %v2065_v60 }
 0x515   : > { %3259 = vmatpush3.msra.mxu1 %v2234_v62  ;;  %3260 = vmatprep.mubr.msk.f32.mxu1 %vm3464_vm3, %v3463_v39 }
 0x516   : > { %3343 = vmatprep.subr.bf16.mxu1 %v3342_v55 }
 0x518   : > { %3261 = vmatmul.mubr.msk.f32.vlgmr.msra.gmra.mrb[18].mxu1 %vm948_vm4, %v2232_v63 }
 0x519   : > { %3345 = vmatpush3.bf16.msra.mxu1 %v3342_v55 }
 0x51a   : > { %3347 = vmatprep.subr.bf16.mxu1 %v3346_v58 }
 0x51d   : > { %3349 = vmatpush3.bf16.msra.mxu1 %v3346_v58 }
 0x5a2   : > { %v1112_v0 = vpop.f32.mrb[4].mxu1 }
 0x5a3   : > { %v3192_v1 = vpop.f32.mrb[5].mxu1 }
 0x5a6   : > { %v1279_v2 = vpop.f32.mrb[6].mxu1 }
 0x5a7   : > { %1618 = vrot.lane.b32.xlu0 %v1279_v2, %s3476_s3  ;;  %v3202_v3 = vpop.f32.mrb[7].mxu1  ;;  %v3081_v2 = vld [vmem:[%s3993_s26] ss:$0 sm:$0xff] }
 0x5aa   : > { %v1446_v45 = vpop.f32.mrb[8].mxu1 }
 0x5ab   : > { %1622 = vrot.lane.b32.xlu1 %v1446_v45, %s3477_s2  ;;  %v3212_v4 = vpop.f32.mrb[9].mxu1  ;;  %v3082_v45 = vld [vmem:[%s3994_s20] ss:$0 sm:$0xff] }
 0x5ae   : > { %v1613_v5 = vpop.f32.mrb[10].mxu1 }
 0x5af   : > { %1626 = vrot.lane.b32.xlu1 %v1613_v5, %s3478_s28  ;;  %v3222_v39 = vpop.f32.mrb[11].mxu1 }
 0x5df   : > { %v1804_v12 = vpop.f32.mrb[12].mxu1 }
 0x5e0   : > { %v3232_v13 = vpop.f32.mrb[13].mxu1 }
 0x5e1   : > { %v2576_v13 = vld [vmem:[%s3644_s23 + $0x18] sm:$0xff] }
 0x5e3   : > { %v1971_v14 = vpop.f32.mrb[14].mxu1 }
 0x5e4   : > { %2310 = vrot.lane.b32.xlu0 %v1971_v14, %s3476_s3  ;;  %v3242_v15 = vpop.f32.mrb[15].mxu1  ;;  %s3996_s3 = sld [smem:[#allocation14_spill]] (!%p3091_p5) }
 0x5e5   : > { %v2577_v15 = vld [vmem:[%s3644_s23 + $0x20] sm:$0xff] }
 0x5e7   : > { %v2138_v16 = vpop.f32.mrb[16].mxu1 }
 0x5e8   : > { %2314 = vrot.lane.b32.xlu0 %v2138_v16, %s3477_s2  ;;  %v3252_v17 = vpop.f32.mrb[17].mxu1  ;;  %v2578_v16 = vld [vmem:[%s3644_s23 + $0x28] sm:$0xff] }
 0x5e9   : > { %v3358_v17 = vpack.c.bf16 %v2578_v16, %v2577_v15  ;;  %v2729_v15 = vld [vmem:[%s3995_s0] sm:$0xff] (!%p3091_p5)  ;;  %v2730_v16 = vld [vmem:[%s3995_s0 + $0x8] sm:$0xff] (!%p3091_p5) }
 0x5eb   : > { %v2305_v18 = vpop.f32.mrb[18].mxu1 }
 0x5ec   : > { %2318 = vrot.lane.b32.xlu1 %v2305_v18, %s3478_s28  ;;  %v3262_v19 = vpop.f32.mrb[19].mxu1  ;;  %v2579_v18 = vld [vmem:[%s3644_s23 + $0x30] sm:$0xff] }
 0x5ed   : > { %v2580_v19 = vld [vmem:[%s3644_s23 + $0x38] sm:$0xff] }
 0x619   : > { %v1619_v20 = vpop.permute.xlu0 %1618 }
 0x61a   : > { %v1629_v22 = vsel %vm948_vm4, %v1112_v0, %v1619_v20  ;;  %v3362_v20 = vpack.c.bf16 %v2580_v19, %v2579_v18  ;;  %v3479_v18 = vmov (!%p3091_p5), 0.0|0.0   ;;  %v3367_v19 = vpack.c.bf16 (!%p3091_p5), %v2730_v16, %v2729_v15 }
 0x61b   : > { %3372 = vmatprep.subr.bf16.mxu1 (!%p3091_p5), %v3479_v18 }
 0x61d   : > { %v1623_v21 = vpop.permute.xlu1 %1622 }
 0x61e   : > { %v1631_v23 = vsel %vm1630_vm5, %v1629_v22, %v1623_v21  ;;  %v3083_v21 = vld [vmem:[%s774_s6] ss:$0 sm:$0xff] }
 0x621   : > { %v1627_v24 = vpop.permute.xlu1 %1626 }
 0x622   : > { %v1633_v25 = vsel %vm1632_vm6, %v1631_v23, %v1627_v24 }
 0x623   : > { %3271 = vmatprep.mubr.msk.f32.mxu0 %vm856_vm1, %v1633_v25 }
 0x656   : > { %v2311_v26 = vpop.permute.xlu0 %2310 }
 0x657   : > { %v2321_v28 = vsel %vm948_vm4, %v1804_v12, %v2311_v26  ;;  %v2575_v12 = vld [vmem:[%s3644_s23 + $0x10] sm:$0xff] }
 0x658   : > { %v3354_v14 = vpack.c.bf16 %v2576_v13, %v2575_v12 }
 0x65a   : > { %v2315_v27 = vpop.permute.xlu0 %2314 }
 0x65b   : > { %v2322_v29 = vsel %vm1630_vm5, %v2321_v28, %v2315_v27 }
 0x65e   : > { %v2319_v30 = vpop.permute.xlu1 %2318 }
 0x65f   : > { %v2323_v31 = vsel %vm1632_vm6, %v2322_v29, %v2319_v30 }
 0x660   : > { %3272 = vmatmul.mubr.msk.f32.vlgmr.msra.gmra.mrb[14].mxu0 %vm856_vm1, %v2323_v31 }
 0x661   : > { %3353 = vmatpush3.bf16.msra.mxu0 %v3350_v11 }
 0x662   : > { %3355 = vmatprep.subr.bf16.mxu0 %v3354_v14 }
 0x665   : > { %3357 = vmatpush3.bf16.msra.mxu0 %v3354_v14 }
 0x666   : > { %3359 = vmatprep.subr.bf16.mxu0 %v3358_v17 }
 0x669   : > { %3361 = vmatpush3.bf16.msra.mxu0 %v3358_v17  ;;  %v2731_v17 = vld [vmem:[%s3995_s0 + $0x10] sm:$0xff] (!%p3091_p5) }
 0x66a   : > { %3363 = vmatprep.subr.bf16.mxu0 %v3362_v20 }
 0x66d   : > { %3365 = vmatpush3.bf16.msra.mxu0 %v3362_v20  ;;  %v2732_v20 = vld [vmem:[%s3995_s0 + $0x18] sm:$0xff] (!%p3091_p5) }
 0x66e   : > { %3366 = vmatprep.subr.bf16.mxu0 (!%p3091_p5), %v3479_v18 }
 0x733   : > { %v3273_v33 = vpop.f32.mrb[14].mxu0 }
 0x734   : > { %v2413_v34 = vadd.f32 %v3273_v33, %v3078_v32  ;;  %v2407_v35 = vpop.f32.mrb[15].mxu0 }
 0x735   : > { %v2408_v37 = vadd.f32 %v3078_v32, %v2407_v35 }
 0x736   : > { %v2417_v40 = vadd.f32 %v2413_v34, %v3685_v38 }
 0x737   : > { %v2416_v41 = vadd.f32 %v2408_v37, %v3681_v36 }
 0x738   : > { %v2423_v46 = vsel %vm856_vm1, %v2417_v40, 0.0 }
 0x739   : > { %2424 = vadd.xlane.f32.xlu1 %v2423_v46  ;;  %v2420_v42 = vsel %vm856_vm1, %v2416_v41, 0.0 }
 0x73a   : > { %2421 = vadd.xlane.f32.xlu0 %v2420_v42 }
 0x7c6   : > { %v2425_v43 = vpop.xlane.xlu1 %2424 }
 0x7c7   : > { %v2428_v44 = vmul.f32 0.03125, %v2425_v43  ;;  %v2422_v47 = vpop.xlane.xlu0 %2421 }
 0x7c8   : > { %v2427_v48 = vmul.f32 0.03125, %v2422_v47 }
 0x7c9   : > { %v2430_v49 = vsub.f32 %v2417_v40, %v2428_v44 }
 0x7ca   : > { %v2429_v50 = vsub.f32 %v2416_v41, %v2427_v48  ;;  %v3086_v48 = vld [vmem:[%s782_s25] ss:$0 sm:$0xff] }
 0x7cb   : > { %v2432_v36 = vmul.f32 %v2430_v49, %v2430_v49 }
 0x7cc   : > { %v2431_v51 = vmul.f32 %v2429_v50, %v2429_v50 }
 0x7cd   : > { %v2436_v52 = vsel %vm856_vm1, %v2432_v36, 0.0 }
 0x7ce   : > { %v2433_v38 = vsel %vm856_vm1, %v2431_v51, 0.0 }
 0x7cf   : > { %2434 = vadd.xlane.f32.xlu0 %v2433_v38 }
 0x7d3   : > { %2437 = vadd.xlane.f32.xlu0 %v2436_v52 }
 0x85c   : > { %v2435_v59 = vpop.xlane.xlu0 %2434 }
 0x85d   : > { %v2439_v60 = vmul.f32 0.03125, %v2435_v59 }
 0x85f   : > { %v2441_v61 = vadd.f32 1e-12, %v2439_v60 }
 0x860   : > { %v2438_v62 = vpop.xlane.xlu0 %2437 }
 0x861   : > { %3441 = vrsqrt.f32 %v2441_v61  ;;  %v2440_v63 = vmul.f32 0.03125, %v2438_v62 }
 0x863   : > { %v2442_v0 = vadd.f32 1e-12, %v2440_v63 }
 0x865   : > { %3443 = vrsqrt.f32 %v2442_v0 }
 0x86b   : > { %v3442_v1 = vpop.eup %3441 }
 0x86c   : > { %v2445_v3 = vmul.f32 %v3442_v1, %v2429_v50 }
 0x86e   : > { %v2453_v4 = vmul.f32 %v3081_v2, %v2445_v3 }
 0x86f   : > { %v3444_v5 = vpop.eup %3443 }
 0x870   : > { %v2446_v39 = vmul.f32 %v3444_v5, %v2430_v49  ;;  %v2461_v6 = vadd.f32 %v3082_v45, %v2453_v4 }
 0x872   : > { %v2454_v7 = vmul.f32 %v3081_v2, %v2446_v39  ;;  %3282 = vmatprep.mubr.msk.f32.mxu1 %vm856_vm1, %v2461_v6 }
 0x874   : > { %v2462_v8 = vadd.f32 %v3082_v45, %v2454_v7 }
 0x876   : > { %3283 = vmatmul.mubr.msk.f32.vlgmr.msra.gmra.mrb[20].mxu1 %vm856_vm1, %v2462_v8 }
 0x949   : > { %v3284_v22 = vpop.f32.mrb[20].mxu1 }
 0x94a   : > { %v2552_v23 = vadd.f32 %v3284_v22, %v3083_v21  ;;  %v2546_v24 = vpop.f32.mrb[21].mxu1 }
 0x94b   : > { %v2547_v25 = vadd.f32 %v3083_v21, %v2546_v24  ;;  %v3481_v21 = vmov (!%p3091_p5), 0.0  }
 0x94c   : > { %v2558_v26 = vmul.f32 0.044715, %v2552_v23  ;;  %v2556_v43 = vmul.f32 0.5, %v2552_v23  ;;  %3323 = vmatprep.mubr.msk.f32.mxu1 (!%p3091_p5), %vm3480_vm8, %v3481_v21 }
 0x94d   : > { %v2557_v27 = vmul.f32 0.044715, %v2547_v25  ;;  %v2555_v46 = vmul.f32 0.5, %v2547_v25 }
 0x94e   : > { %v2560_v28 = vmul.f32 %v2558_v26, %v2552_v23 }
 0x94f   : > { %v2559_v29 = vmul.f32 %v2557_v27, %v2547_v25  ;;  %v2814_v27 = vld [vmem:[%s3996_s3] sm:$0xff] (!%p3091_p5) }
 0x950   : > { %v2562_v30 = vmul.f32 %v2560_v28, %v2552_v23  ;;  %v2815_v28 = vld [vmem:[%s3996_s3 + $0x8] sm:$0xff] (!%p3091_p5) }
 0x951   : > { %v2561_v31 = vmul.f32 %v2559_v29, %v2547_v25  ;;  %v2816_v29 = vld [vmem:[%s3996_s3 + $0x10] sm:$0xff] (!%p3091_p5) }
 0x952   : > { %v2564_v32 = vadd.f32 %v2562_v30, %v2552_v23  ;;  %v3370_v23 = vpack.c.bf16 (!%p3091_p5), %v2732_v20, %v2731_v17  ;;  %v3373_v30 = vpack.c.bf16 (!%p3091_p5), %v2815_v28, %v2814_v27 }
 0x953   : > { %v2563_v33 = vadd.f32 %v2561_v31, %v2547_v25  ;;  %v2817_v31 = vld [vmem:[%s3996_s3 + $0x18] sm:$0xff] (!%p3091_p5) }
 0x954   : > { %v2566_v34 = vmul.f32 0.7978846, %v2564_v32  ;;  %3374 = vmatpush3.bf16.msra.mxu1 (!%p3091_p5), %v3373_v30  ;;  %v3376_v32 = vpack.c.bf16 (!%p3091_p5), %v2817_v31, %v2816_v29 }
 0x955   : > { %v2565_v35 = vmul.f32 0.7978846, %v2563_v33  ;;  %3375 = vmatprep.subr.bf16.mxu1 (!%p3091_p5), %v3479_v18  ;;  %v3092_v33 = vld [vmem:[%s3997_s30] ss:$0 sm:$0xff] (!%p3091_p5) }
 0x956   : > { %3445 = vtanh.f32 %v2566_v34 }
 0x957   : > { %3447 = vtanh.f32 %v2565_v35 }
 0x958   : > { %3377 = vmatpush3.bf16.msra.mxu1 (!%p3091_p5), %v3376_v32 }
 0x960   : > { %v3446_v37 = vpop.eup %3445 }
 0x961   : > { %v3448_v40 = vpop.eup %3447  ;;  %v2570_v41 = vadd.f32 1.0, %v3446_v37 }
 0x962   : > { %v2569_v42 = vadd.f32 1.0, %v3448_v40 }
 0x963   : > { %v2572_v47 = vmul.f32 %v2570_v41, %v2556_v43  ;;  %v3094_v41 = vld [vmem:[#allocation4] ss:$0 sm:$0xff] (!%p3091_p5) }
 0x964   : > { %v2571_v44 = vmul.f32 %v2569_v42, %v2555_v46 }
 0x966   : > { %3301 = vmatprep.mubr.msk.f32.mxu0 %vm2588_vm7, %v2571_v44 }
 0x967   : > { %3302 = vmatmul.mubr.msk.f32.vlgmr.msra.gmra.mrb[16].mxu0 %vm2588_vm7, %v2572_v47 }
 0x968   : > { %3312 = vmatprep.mubr.msk.f32.mxu0 (!%p3091_p5), %vm3480_vm8, %v3481_v21  ;;  %3368 = vmatpush3.bf16.msra.mxu0 (!%p3091_p5), %v3367_v19 }
 0x969   : > { %3369 = vmatprep.subr.bf16.mxu0 (!%p3091_p5), %v3479_v18 }
 0x96c   : > { %3371 = vmatpush3.bf16.msra.mxu0 (!%p3091_p5), %v3370_v23 }
 0xa3a   : > { %v3303_v49 = vpop.f32.mrb[16].mxu0 }
 0xa3b   : > { %v2667_v50 = vadd.f32 %v3303_v49, %v3086_v48  ;;  %v2661_v51 = vpop.f32.mrb[17].mxu0 }
 0xa3c   : > { %v2662_v38 = vadd.f32 %v3086_v48, %v2661_v51 }
 0xa3d   : > { %v2671_v36 = vadd.f32 %v2667_v50, %v2462_v8 }
 0xa3e   : > { %v2670_v52 = vadd.f32 %v2662_v38, %v2461_v6  ;;  %v3089_v6 = vld [vmem:[%s785_s27] ss:$0 sm:$0xff] }
 0xa3f   : > { %v2677_v53 = vsel %vm856_vm1, %v2671_v36, 0.0 }
 0xa40   : > { %2678 = vadd.xlane.f32.xlu0 %v2677_v53  ;;  %v2674_v54 = vsel %vm856_vm1, %v2670_v52, 0.0 }
 0xa41   : > { %2675 = vadd.xlane.f32.xlu1 %v2674_v54 }
 0xacd   : > { %v2679_v55 = vpop.xlane.xlu0 %2678 }
 0xace   : > { %v2681_v56 = vmul.f32 0.03125, %v2679_v55  ;;  %v2676_v57 = vpop.xlane.xlu1 %2675 }
 0xacf   : > { %v2680_v58 = vmul.f32 0.03125, %v2676_v57 }
 0xad0   : > { %v2683_v59 = vsub.f32 %v2671_v36, %v2681_v56 }
 0xad1   : > { %v2682_v60 = vsub.f32 %v2670_v52, %v2680_v58 }
 0xad2   : > { %v2685_v61 = vmul.f32 %v2683_v59, %v2683_v59 }
 0xad3   : > { %v2684_v62 = vmul.f32 %v2682_v60, %v2682_v60 }
 0xad4   : > { %v2689_v63 = vsel %vm856_vm1, %v2685_v61, 0.0 }
 0xad5   : > { %2690 = vadd.xlane.f32.xlu0 %v2689_v63  ;;  %v2686_v0 = vsel %vm856_vm1, %v2684_v62, 0.0 }
 0xad6   : > { %2687 = vadd.xlane.f32.xlu1 %v2686_v0 }
 0xb62   : > { %v2691_v1 = vpop.xlane.xlu0 %2690 }
 0xb63   : > { %v2693_v2 = vmul.f32 0.03125, %v2691_v1  ;;  %v2688_v3 = vpop.xlane.xlu1 %2687 }
 0xb64   : > { %v2692_v45 = vmul.f32 0.03125, %v2688_v3 }
 0xb65   : > { %v2695_v4 = vadd.f32 1e-12, %v2693_v2 }
 0xb66   : > { %v2694_v5 = vadd.f32 1e-12, %v2692_v45 }
 0xb67   : > { %3449 = vrsqrt.f32 %v2695_v4 }
 0xb68   : > { %3451 = vrsqrt.f32 %v2694_v5 }
 0xb71   : > { %v3450_v39 = vpop.eup %3449 }
 0xb72   : > { %v3452_v7 = vpop.eup %3451  ;;  %v2699_v8 = vmul.f32 %v3450_v39, %v2683_v59 }
 0xb73   : > { %v2698_v10 = vmul.f32 %v3452_v7, %v2682_v60  ;;  %2721 = sbr.rel (%p3091_p5) target bundleno = 3387 (0xd3b), region = 108 }
 0xb74   : > { %v2707_v11 = vmul.f32 %v3089_v6, %v2699_v8 }
 0xb75   : > { %v2706_v12 = vmul.f32 %v3089_v6, %v2698_v10 }
 0xb76   : > { %v2715_v13 = vadd.f32 %v3090_v9, %v2707_v11 }
 0xb77   : > { %v2714_v14 = vadd.f32 %v3090_v9, %v2706_v12 }
 0xb78   : > { %2717 = vst.msk [vmem:[#allocation2 + $0x8] sm:$0xff] %vm856_vm1, %v2715_v13 }
 0xb79   : > { %2716 = vst.msk [vmem:[#allocation2] sm:$0xff] %vm856_vm1, %v2714_v14 }
 0xb7f   : > { %v2723_v22 = vld [vmem:[#allocation2 + $0x8] sm:$0x1] }
 0xb80   : > { %v2725_v24 = vrot.slane %v2723_v22, 7  ;;  %v2722_v25 = vld [vmem:[#allocation2] sm:$0x1] }
 0xb82   : > { %v2728_v26 = vsel %vm2727_vm9, %v2722_v25, %v2725_v24 }
 0xb83   : > { %3313 = vmatmul.mubr.msk.f32.vlgmr.msra.gmra.mrb[0].mxu0 %vm856_vm1, %v2728_v26 }
 0xc56   : > { %v2809_v34 = vpop.f32.mrb[0].mxu0 }
 0xc57   : > { %v2810_v35 = vadd.f32 %v3092_v33, %v2809_v34  ;;  %v3314_v37 = vpop.f32.mrb[1].mxu0 }
 0xc59   : > { %3453 = vtanh.f32 %v2810_v35 }
 0xc63   : > { %v3454_v40 = vpop.eup %3453 }
 0xc64   : > { %3324 = vmatmul.mubr.msk.f32.vlgmr.msra.gmra.mrb[0].mxu1 %vm856_vm1, %v3454_v40 }
 0xd37   : > { %v2894_v46 = vpop.f32.mrb[0].mxu1 }
 0xd38   : > { %v2895_v42 = vadd.f32 %v3094_v41, %v2894_v46  ;;  %v3325_v43 = vpop.f32.mrb[1].mxu1 }
 0xd3a   : > { %2899 = vst.msk [vmem:[%s3998_s18] sm:$0x3] %vm2898_vm10, %v2895_v42 }
 0xd3b PF: > { %s3999_s19 = sld [smem:[#allocation5_spill]] }
 0xd41   : > { %s32_s23 = sadd.s32 1, %s3999_s19  }
 0xd42   : > { %p29_p6 = scmp.ge.s32.totalorder %s32_s23, 4  }
 0xd44   :  { %31 = sbr.rel (!%p29_p6) target bundleno = 11 (0xb), region = 167 }

</bundles_post_ra>
